<compile_context>
chip_gen: v7x
topology: tpu7x:2x2x1
jax: 0.10.0
libtpu: 0.0.40
codegen_flags: <defaults>
</compile_context>

<pallas_src>
import functools

import jax
import jax.numpy as jnp
from jax.experimental import pallas as pl
from jax.experimental.pallas import tpu as pltpu

LANE = 128  # lane-dense feature width (all layer widths are padded to this)


def _gcn_stack_kernel(a_ref, x_ref, w_ref, b_ref, o_ref,
                      acc_ref, h_buf, hw_buf, *a_res_scratch,
                      num_layers, tm, tk, a_resident):
    """Fused L-layer GCN stack:  H_{l+1} = act(A_hat @ (H_l @ W_l) + b_l).

    grid = (L, N/tm row tiles, N/tk reduction tiles)   (reduction axis last)

      a_ref  : stream: (1, tm, tk) bf16 A block (contiguous, index i*nk+k)
               resident: raw HBM ref (n_blk*n_blk, tm, tk), copied once to VMEM
      x_ref  : (tk, Fp)    bf16  layer-0 input tile; only moves at (l==0,i==0)
      w_ref  : (1, Fp, Fp) bf16  layer-l weight
      b_ref  : (1, 1, Fp)  f32   layer-l bias
      o_ref  : (tm, Fp)    f32   output row tile; written only at l == L-1
      acc_ref: VMEM (tm, Fp) f32 K-reduction accumulator
      h_buf  : VMEM (Np, Fp) bf16 layer input H_l, resident across layers
      hw_buf : VMEM (Np, Fp) bf16 H_l @ W_l, computed once per (l, K-tile)
      a_res_scratch (resident only): a_vmem (n_blk*n_blk, tm, tk) bf16, DMA sem
    """
    l = pl.program_id(0)
    i = pl.program_id(1)
    k = pl.program_id(2)
    nk = pl.num_programs(2)

    i_row = pl.multiple_of(i * tm, tm)
    k_row = pl.multiple_of(k * tk, tk)

    if a_resident:
        a_vmem, a_sem = a_res_scratch

        # One-time DMA of the whole blocked A_hat into VMEM; reused by every
        # layer (A is read from HBM once instead of L times).
        @pl.when((l == 0) & (i == 0) & (k == 0))
        def _():
            cp = pltpu.make_async_copy(a_ref, a_vmem, a_sem)
            cp.start()
            cp.wait()

        a_blk = a_vmem[i * nk + k]
    else:
        a_blk = a_ref[0]

    # --- HW[k] = H_l[k] @ W_l, computed only on the first row tile of a layer
    #     (reused by all row tiles).  Two branches: layer 0 reads the streamed
    #     input features, later layers read the resident H_l.
    @pl.when(i == 0)
    def _():
        @pl.when(l == 0)
        def _():
            hw = jnp.dot(x_ref[...], w_ref[0],
                         preferred_element_type=jnp.float32)
            hw_buf[pl.ds(k_row, tk), :] = hw.astype(jnp.bfloat16)

        @pl.when(l > 0)
        def _():
            hw = jnp.dot(h_buf[pl.ds(k_row, tk), :], w_ref[0],
                         preferred_element_type=jnp.float32)
            hw_buf[pl.ds(k_row, tk), :] = hw.astype(jnp.bfloat16)

    # --- accumulator-pattern matmul over the neighbor (K) axis ---
    @pl.when(k == 0)
    def _():
        acc_ref[...] = jnp.zeros_like(acc_ref)

    acc_ref[...] += jnp.dot(a_blk, hw_buf[pl.ds(k_row, tk), :],
                            preferred_element_type=jnp.float32)

    # --- finalize this row tile: hidden layers -> bias + ReLU kept resident in
    #     VMEM; last layer -> bias only, stored to the (only) HBM output. ---
    @pl.when(k == nk - 1)
    def _():
        z = acc_ref[...] + b_ref[0]

        @pl.when(l < num_layers - 1)
        def _():
            h_buf[pl.ds(i_row, tm), :] = jnp.maximum(z, 0.0).astype(jnp.bfloat16)

        @pl.when(l == num_layers - 1)
        def _():
            o_ref[...] = z.astype(o_ref.dtype)


def _pad_to(x, shape):
    return jnp.pad(x, [(0, s - d) for d, s in zip(x.shape, shape)])


def _round_up(n, m):
    return int(m * ((n + m - 1) // m))


def _vmem_capacity_bytes():
    try:
        return int(pltpu.get_tpu_info().vmem_capacity_bytes)
    except Exception:
        return 128 * 1024 * 1024  # conservative fallback (v5e/v6e physical)


def prepare_gcn_operands(a_norm, feats, weights, biases, *, tile=None,
                         f_pad=LANE):
    """One-time pad / bf16-cast / block of the operands.

    Call once per graph and reuse across forwards (hoists the full N^2 cast and
    blocking of A_hat out of the hot path).
    """
    n = a_norm.shape[0]
    num_layers = len(weights)
    assert num_layers >= 1 and feats.shape[0] == n
    for w in weights:
        assert max(w.shape) <= f_pad, "layer widths must fit the 128-lane pad"
        # TODO(synk): widths > 128 need a tiled feature axis (pad to 256 for
        # the 256-wide v6e/v7x MXU).

    if tile is None:
        tile = 512 if n > 1024 else 256  # big tiles amortize per-step overhead
    n_pad = _round_up(n, tile)
    n_blk = n_pad // tile

    # bf16 MXU operands (halves A_hat HBM traffic); f32 bias / accumulator.
    a_p = _pad_to(jnp.asarray(a_norm, jnp.float32),
                  (n_pad, n_pad)).astype(jnp.bfloat16)
    # Block A into contiguous (tile, tile) tiles -> each grid step's DMA (or
    # resident-VMEM lookup) is one fully contiguous block.
    a_blocked = (a_p.reshape(n_blk, tile, n_blk, tile)
                    .transpose(0, 2, 1, 3)
                    .reshape(n_blk * n_blk, tile, tile))

    x_p = _pad_to(jnp.asarray(feats, jnp.float32),
                  (n_pad, f_pad)).astype(jnp.bfloat16)
    w_stack = jnp.stack(
        [_pad_to(jnp.asarray(w, jnp.float32), (f_pad, f_pad)) for w in weights]
    ).astype(jnp.bfloat16)
    b_stack = jnp.stack(
        [_pad_to(jnp.asarray(b, jnp.float32).reshape(1, -1), (1, f_pad))
         for b in biases]
    ).astype(jnp.float32)

    meta = dict(n=n, n_pad=n_pad, tile=tile, f_pad=f_pad,
                num_layers=num_layers, f_out=int(weights[-1].shape[1]))
    return (a_blocked, x_p, w_stack, b_stack), meta


def gcn_stack_forward_prepared(operands, meta, *, force_stream=False):
    """Full GCN stack  act(A_hat @ H @ W_l + b_l)  in one fused Pallas call."""
    a_blocked, x_p, w_stack, b_stack = operands
    n_pad = meta["n_pad"]
    tile = meta["tile"]
    f_pad = meta["f_pad"]
    num_layers = meta["num_layers"]
    tm = tk = tile
    n_blk = n_pad // tile

    # Generation-aware VMEM budget (v7x only has 64 MiB per TC).
    cap = _vmem_capacity_bytes()
    bs, fs = 2, 4
    base = (2 * n_pad * f_pad * bs          # resident h_buf + hw_buf
            + tm * f_pad * fs               # f32 accumulator
            + 2 * tk * f_pad * bs           # X double buffer
            + 2 * f_pad * f_pad * bs        # W double buffer
            + 2 * 8 * f_pad * fs            # b double buffer (sublane padded)
            + 2 * tm * f_pad * fs)          # out double buffer
    a_bytes = n_pad * n_pad * bs
    a_resident = (not force_stream) and (base + a_bytes <= int(0.6 * cap))
    need = base + (a_bytes if a_resident else 2 * tm * tk * bs)
    vmem_limit = int(min(int(0.85 * cap), max(need + (4 << 20), 32 << 20)))

    if a_resident:
        a_spec = pl.BlockSpec(memory_space=pl.ANY)  # raw HBM ref, copied once
    else:
        a_spec = pl.BlockSpec((1, tm, tk),
                              lambda l, i, k: (i * n_blk + k, 0, 0))

    in_specs = [
        a_spec,
        # X only moves during (l==0, i==0); otherwise the block index is frozen
        # so no redundant DMA is issued.
        pl.BlockSpec((tk, f_pad),
                     lambda l, i, k: (jnp.where((l == 0) & (i == 0), k, 0), 0)),
        pl.BlockSpec((1, f_pad, f_pad), lambda l, i, k: (l, 0, 0)),   # W_l
        pl.BlockSpec((1, 1, f_pad), lambda l, i, k: (l, 0, 0)),       # b_l
    ]
    # Output block index only advances on the last layer -> exactly one HBM
    # writeback per row tile for the whole stack.
    out_spec = pl.BlockSpec(
        (tm, f_pad),
        lambda l, i, k: (jnp.where(l == num_layers - 1, i, 0), 0))

    scratch = [
        pltpu.VMEM((tm, f_pad), jnp.float32),       # acc
        pltpu.VMEM((n_pad, f_pad), jnp.bfloat16),   # resident H_l
        pltpu.VMEM((n_pad, f_pad), jnp.bfloat16),   # resident H_l @ W_l
    ]
    if a_resident:
        scratch += [pltpu.VMEM((n_blk * n_blk, tm, tk), jnp.bfloat16),
                    pltpu.SemaphoreType.DMA]

    out = pl.pallas_call(
        functools.partial(_gcn_stack_kernel, num_layers=num_layers,
                          tm=tm, tk=tk, a_resident=a_resident),
        out_shape=jax.ShapeDtypeStruct((n_pad, f_pad), jnp.float32),
        grid_spec=pltpu.PrefetchScalarGridSpec(
            num_scalar_prefetch=0,
            grid=(num_layers, n_blk, n_blk),
            in_specs=in_specs,
            out_specs=out_spec,
            scratch_shapes=scratch,
        ),
        compiler_params=pltpu.CompilerParams(
            # Layer/row axes carry VMEM-resident state (h_buf / hw_buf), so all
            # axes must stay "arbitrary"; the K reduction axis is last.
            # TODO(synk): v7x megacore variant needs the HW precompute and
            # h_buf sharing restructured (row axis "parallel" / VMEM_SHARED).
            dimension_semantics=("arbitrary", "arbitrary", "arbitrary"),
            vmem_limit_bytes=vmem_limit,
        ),
    )(a_blocked, x_p, w_stack, b_stack)
    return out[:meta["n"], :]


def gcn_stack_forward(a_norm, feats, weights, biases, *, tile=None,
                      force_stream=False):
    operands, meta = prepare_gcn_operands(a_norm, feats, weights, biases,
                                          tile=tile)
    h = gcn_stack_forward_prepared(operands, meta, force_stream=force_stream)
    return h, meta


def static_graph_encoder_forward(in_sample, params, *, force_stream=False):
    """Mirror of StaticGraphEncoder.forward contract.

    in_sample: ((a_norm, node_feats), target_node_ids)  -- the "snapshot" is
               its normalized adjacency plus node feature matrix.
    params:    list of (W, b) per layer (the `self.layers` equivalent).
    Returns    (embeddings_of_target_ids, target_node_ids).
    """
    (a_norm, feats), target_ids = in_sample
    weights = [w for w, _ in params]
    biases = [b for _, b in params]
    h, meta = gcn_stack_forward(a_norm, feats, weights, biases,
                                force_stream=force_stream)
    emb = h[:, :meta["f_out"]]
    # TODO(synk): mini_batch=True (DGLBlock neighborhood sampling) path and an
    # in-kernel target-row gather (scalar-prefetched pl.Element rows) are not
    # implemented; only the full-graph path is.
    return emb[target_ids], target_ids


def make_normalized_adjacency(key, n_nodes, edge_prob=0.2):
    """Glue: random undirected graph + self loops, D^-1/2 (A+I) D^-1/2."""
    upper = (jax.random.uniform(key, (n_nodes, n_nodes)) < edge_prob).astype(jnp.float32)
    a = jnp.triu(upper, k=1)
    a = a + a.T + jnp.eye(n_nodes, dtype=jnp.float32)
    deg = jnp.sum(a, axis=1)
    d_inv_sqrt = 1.0 / jnp.sqrt(deg)
    return a * d_inv_sqrt[:, None] * d_inv_sqrt[None, :]


def _reference_forward(a_norm, feats, params):
    """Plain-JAX reference mirroring the kernel's bf16 MXU casts."""
    h = feats
    nl = len(params)
    for li, (w, b) in enumerate(params):
        hw = jnp.dot(h.astype(jnp.bfloat16), w.astype(jnp.bfloat16),
                     preferred_element_type=jnp.float32).astype(jnp.bfloat16)
        z = jnp.dot(a_norm.astype(jnp.bfloat16), hw,
                    preferred_element_type=jnp.float32) + b
        h = jnp.maximum(z, 0.0) if li < nl - 1 else z
    return h


if __name__ == "__main__":
    key = jax.random.PRNGKey(0)
    (k_graph, k_feat, k_w0, k_w1, k_w2,
     k_graph2, k_feat2, k_w3, k_w4) = jax.random.split(key, 9)

    # --- Case 1: small graph, 3 layers (A_hat cached resident in VMEM) ------
    n_nodes, in_feats, hidden = 200, 32, 48
    a_norm = make_normalized_adjacency(k_graph, n_nodes)
    feats = jax.random.normal(k_feat, (n_nodes, in_feats), dtype=jnp.float32)

    w0 = jax.random.normal(k_w0, (in_feats, hidden), dtype=jnp.float32) * 0.2
    w1 = jax.random.normal(k_w1, (hidden, hidden), dtype=jnp.float32) * 0.2
    w2 = jax.random.normal(k_w2, (hidden, hidden), dtype=jnp.float32) * 0.2
    b0 = jnp.full((1, hidden), 0.01, dtype=jnp.float32)
    b1 = jnp.full((1, hidden), 0.01, dtype=jnp.float32)
    b2 = jnp.zeros((1, hidden), dtype=jnp.float32)
    params = [(w0, b0), (w1, b1), (w2, b2)]
    target_ids = jnp.array([0, 3, 7, 42, 123, 199], dtype=jnp.int32)

    emb, ids = static_graph_encoder_forward(((a_norm, feats), target_ids), params)
    emb = jax.block_until_ready(emb)
    ref = _reference_forward(a_norm, feats, params)[target_ids]
    assert emb.shape == (target_ids.shape[0], hidden), emb.shape
    err1 = float(jnp.max(jnp.abs(emb - ref)))
    assert jnp.allclose(emb, ref, atol=1e-2, rtol=5e-2), f"case1 max|err|={err1}"

    # --- Case 2: HBM-streaming path (multi-tile grid, force_stream=True) ----
    n2, f2, h2 = 300, 24, 40
    a2 = make_normalized_adjacency(k_graph2, n2)
    x2 = jax.random.normal(k_feat2, (n2, f2), dtype=jnp.float32)
    w3 = jax.random.normal(k_w3, (f2, h2), dtype=jnp.float32) * 0.2
    w4 = jax.random.normal(k_w4, (h2, h2), dtype=jnp.float32) * 0.2
    b3 = jnp.full((1, h2), 0.01, dtype=jnp.float32)
    b4 = jnp.zeros((1, h2), dtype=jnp.float32)
    params2 = [(w3, b3), (w4, b4)]
    tgt2 = jnp.array([1, 5, 99, 255, 299], dtype=jnp.int32)

    emb2, _ = static_graph_encoder_forward(((a2, x2), tgt2), params2,
                                           force_stream=True)
    emb2 = jax.block_until_ready(emb2)
    ref2 = _reference_forward(a2, x2, params2)[tgt2]
    err2 = float(jnp.max(jnp.abs(emb2 - ref2)))
    assert emb2.shape == (tgt2.shape[0], h2), emb2.shape
    assert jnp.allclose(emb2, ref2, atol=1e-2, rtol=5e-2), f"case2 max|err|={err2}"

    print("KERNEL_OK")
</pallas_src>

<mosaic_0001>
module attributes {stable_mosaic.version = 11 : i64} {
  func.func @_gcn_stack_kernel(%arg0: i32, %arg1: i32, %arg2: i32, %arg3: memref<1x256x256xbf16, #tpu.memory_space<any>>, %arg4: memref<256x128xbf16, #tpu.memory_space<vmem>>, %arg5: memref<1x128x128xbf16, #tpu.memory_space<vmem>>, %arg6: memref<1x1x128xf32, #tpu.memory_space<vmem>>, %arg7: memref<256x128xf32, #tpu.memory_space<vmem>>, %arg8: memref<256x128xf32, #tpu.memory_space<vmem>>, %arg9: memref<256x128xbf16, #tpu.memory_space<vmem>>, %arg10: memref<256x128xbf16, #tpu.memory_space<vmem>>, %arg11: memref<1x256x256xbf16, #tpu.memory_space<vmem>>, %arg12: memref<!tpu.dma_semaphore, #tpu.memory_space<semaphore_mem>>) attributes {dimension_semantics = [#tpu.dimension_semantics<arbitrary>, #tpu.dimension_semantics<arbitrary>, #tpu.dimension_semantics<arbitrary>], iteration_bounds = array<i64: 3, 1, 1>, scalar_prefetch = 0 : i64, scratch_operands = 5 : i64, tpu.core_type = #tpu.core_type<tc>, window_params = [{}, {transform_indices = @transform_1, window_bounds = array<i64: 256, 128>}, {transform_indices = @transform_2, window_bounds = array<i64: 1, 128, 128>}, {transform_indices = @transform_3, window_bounds = array<i64: 1, 1, 128>}, {transform_indices = @transform_4, window_bounds = array<i64: 256, 128>}]} {
    %c256_i32 = arith.constant 256 : i32
    %0 = arith.muli %arg1, %c256_i32 : i32
    %1 = tpu.assume_multiple %0, 256 : i32
    %c256_i32_0 = arith.constant 256 : i32
    %2 = arith.muli %arg2, %c256_i32_0 : i32
    %3 = tpu.assume_multiple %2, 256 : i32
    %c0_i32 = arith.constant 0 : i32
    %4 = arith.cmpi eq, %arg0, %c0_i32 : i32
    %c0_i32_1 = arith.constant 0 : i32
    %5 = arith.cmpi eq, %arg1, %c0_i32_1 : i32
    %6 = arith.andi %4, %5 : i1
    %c0_i32_2 = arith.constant 0 : i32
    %7 = arith.cmpi eq, %arg2, %c0_i32_2 : i32
    %8 = arith.andi %6, %7 : i1
    %9 = arith.extui %8 : i1 to i32
    %c0_i32_3 = arith.constant 0 : i32
    %10 = arith.cmpi ne, %9, %c0_i32_3 : i32
    scf.if %10 {
      tpu.enqueue_dma source(%arg3 : memref<1x256x256xbf16, #tpu.memory_space<any>>) target(%arg11 : memref<1x256x256xbf16, #tpu.memory_space<vmem>>) target_semaphore(%arg12 : memref<!tpu.dma_semaphore, #tpu.memory_space<semaphore_mem>>)
      tpu.wait_dma2 semaphore(%arg12 : memref<!tpu.dma_semaphore, #tpu.memory_space<semaphore_mem>>) src(%arg3 : memref<1x256x256xbf16, #tpu.memory_space<any>>) dst(%arg11 : memref<1x256x256xbf16, #tpu.memory_space<vmem>>)
    } else {
    }
    %c1_i32 = arith.constant 1 : i32
    %11 = arith.muli %arg1, %c1_i32 : i32
    %12 = arith.addi %11, %arg2 : i32
    %13 = arith.index_cast %12 : i32 to index
    %c0 = arith.constant 0 : index
    %c0_4 = arith.constant 0 : index
    %14 = vector.load %arg11[%13, %c0, %c0_4] : memref<1x256x256xbf16, #tpu.memory_space<vmem>>, vector<1x256x256xbf16>
    %15 = vector.shape_cast %14 : vector<1x256x256xbf16> to vector<256x256xbf16>
    %c0_i32_5 = arith.constant 0 : i32
    %16 = arith.cmpi eq, %arg1, %c0_i32_5 : i32
    %17 = arith.extui %16 : i1 to i32
    %c0_i32_6 = arith.constant 0 : i32
    %18 = arith.cmpi ne, %17, %c0_i32_6 : i32
    scf.if %18 {
      %c0_i32_16 = arith.constant 0 : i32
      %31 = arith.cmpi eq, %arg0, %c0_i32_16 : i32
      %32 = arith.extui %31 : i1 to i32
      %c0_i32_17 = arith.constant 0 : i32
      %33 = arith.cmpi ne, %32, %c0_i32_17 : i32
      scf.if %33 {
        %c0_20 = arith.constant 0 : index
        %c0_21 = arith.constant 0 : index
        %37 = vector.load %arg4[%c0_20, %c0_21] : memref<256x128xbf16, #tpu.memory_space<vmem>>, vector<256x128xbf16>
        %c0_22 = arith.constant 0 : index
        %c0_23 = arith.constant 0 : index
        %c0_24 = arith.constant 0 : index
        %38 = vector.load %arg5[%c0_22, %c0_23, %c0_24] : memref<1x128x128xbf16, #tpu.memory_space<vmem>>, vector<1x128x128xbf16>
        %39 = vector.shape_cast %38 : vector<1x128x128xbf16> to vector<128x128xbf16>
        %cst_25 = arith.constant dense<0.000000e+00> : vector<256x128xf32>
        %40 = tpu.matmul %37, %39, %cst_25 {dimension_numbers = #tpu.dot_dimension_numbers<[1], [0], [0], [1], [0, 0, 1, 1], [], []>} : vector<256x128xbf16>, vector<128x128xbf16>, vector<256x128xf32> -> vector<256x128xf32>
        %41 = arith.truncf %40 : vector<256x128xf32> to vector<256x128xbf16>
        %42 = arith.index_cast %3 : i32 to index
        %c0_26 = arith.constant 0 : index
        %43 = vector.load %arg10[%42, %c0_26] : memref<256x128xbf16, #tpu.memory_space<vmem>>, vector<256x128xbf16>
        tpu.vector_store %arg10[%42, %c0_26], %41 {strides = array<i32>} : memref<256x128xbf16, #tpu.memory_space<vmem>>, vector<256x128xbf16>,
      } else {
      }
      %c0_i32_18 = arith.constant 0 : i32
      %34 = arith.cmpi sgt, %arg0, %c0_i32_18 : i32
      %35 = arith.extui %34 : i1 to i32
      %c0_i32_19 = arith.constant 0 : i32
      %36 = arith.cmpi ne, %35, %c0_i32_19 : i32
      scf.if %36 {
        %37 = arith.index_cast %3 : i32 to index
        %c0_20 = arith.constant 0 : index
        %38 = vector.load %arg9[%37, %c0_20] : memref<256x128xbf16, #tpu.memory_space<vmem>>, vector<256x128xbf16>
        %c0_21 = arith.constant 0 : index
        %c0_22 = arith.constant 0 : index
        %c0_23 = arith.constant 0 : index
        %39 = vector.load %arg5[%c0_21, %c0_22, %c0_23] : memref<1x128x128xbf16, #tpu.memory_space<vmem>>, vector<1x128x128xbf16>
        %40 = vector.shape_cast %39 : vector<1x128x128xbf16> to vector<128x128xbf16>
        %cst_24 = arith.constant dense<0.000000e+00> : vector<256x128xf32>
        %41 = tpu.matmul %38, %40, %cst_24 {dimension_numbers = #tpu.dot_dimension_numbers<[1], [0], [0], [1], [0, 0, 1, 1], [], []>} : vector<256x128xbf16>, vector<128x128xbf16>, vector<256x128xf32> -> vector<256x128xf32>
        %42 = arith.truncf %41 : vector<256x128xf32> to vector<256x128xbf16>
        %43 = arith.index_cast %3 : i32 to index
        %c0_25 = arith.constant 0 : index
        %44 = vector.load %arg10[%43, %c0_25] : memref<256x128xbf16, #tpu.memory_space<vmem>>, vector<256x128xbf16>
        tpu.vector_store %arg10[%43, %c0_25], %42 {strides = array<i32>} : memref<256x128xbf16, #tpu.memory_space<vmem>>, vector<256x128xbf16>,
      } else {
      }
    } else {
    }
    %c0_i32_7 = arith.constant 0 : i32
    %19 = arith.cmpi eq, %arg2, %c0_i32_7 : i32
    %20 = arith.extui %19 : i1 to i32
    %c0_i32_8 = arith.constant 0 : i32
    %21 = arith.cmpi ne, %20, %c0_i32_8 : i32
    scf.if %21 {
      %cst_16 = arith.constant 0.000000e+00 : f32
      %31 = vector.broadcast %cst_16 : f32 to vector<256x128xf32>
      %c0_17 = arith.constant 0 : index
      %c0_18 = arith.constant 0 : index
      %32 = vector.load %arg8[%c0_17, %c0_18] : memref<256x128xf32, #tpu.memory_space<vmem>>, vector<256x128xf32>
      tpu.vector_store %arg8[%c0_17, %c0_18], %31 {strides = array<i32>} : memref<256x128xf32, #tpu.memory_space<vmem>>, vector<256x128xf32>,
    } else {
    }
    %c0_9 = arith.constant 0 : index
    %c0_10 = arith.constant 0 : index
    %22 = vector.load %arg8[%c0_9, %c0_10] : memref<256x128xf32, #tpu.memory_space<vmem>>, vector<256x128xf32>
    %23 = arith.index_cast %3 : i32 to index
    %c0_11 = arith.constant 0 : index
    %24 = vector.load %arg10[%23, %c0_11] : memref<256x128xbf16, #tpu.memory_space<vmem>>, vector<256x128xbf16>
    %cst = arith.constant dense<0.000000e+00> : vector<256x128xf32>
    %25 = tpu.matmul %15, %24, %cst {dimension_numbers = #tpu.dot_dimension_numbers<[1], [0], [0], [1], [0, 0, 1, 1], [], []>} : vector<256x256xbf16>, vector<256x128xbf16>, vector<256x128xf32> -> vector<256x128xf32>
    %26 = arith.addf %22, %25 : vector<256x128xf32>
    %c0_12 = arith.constant 0 : index
    %c0_13 = arith.constant 0 : index
    %27 = vector.load %arg8[%c0_12, %c0_13] : memref<256x128xf32, #tpu.memory_space<vmem>>, vector<256x128xf32>
    tpu.vector_store %arg8[%c0_12, %c0_13], %26 {strides = array<i32>} : memref<256x128xf32, #tpu.memory_space<vmem>>, vector<256x128xf32>,
    %c0_i32_14 = arith.constant 0 : i32
    %28 = arith.cmpi eq, %arg2, %c0_i32_14 : i32
    %29 = arith.extui %28 : i1 to i32
    %c0_i32_15 = arith.constant 0 : i32
    %30 = arith.cmpi ne, %29, %c0_i32_15 : i32
    scf.if %30 {
      %c0_16 = arith.constant 0 : index
      %c0_17 = arith.constant 0 : index
      %31 = vector.load %arg8[%c0_16, %c0_17] : memref<256x128xf32, #tpu.memory_space<vmem>>, vector<256x128xf32>
      %c0_18 = arith.constant 0 : index
      %c0_19 = arith.constant 0 : index
      %c0_20 = arith.constant 0 : index
      %32 = vector.load %arg6[%c0_18, %c0_19, %c0_20] : memref<1x1x128xf32, #tpu.memory_space<vmem>>, vector<1x1x128xf32>
      %33 = vector.shape_cast %32 : vector<1x1x128xf32> to vector<1x128xf32>
      %34 = vector.broadcast %33 : vector<1x128xf32> to vector<256x128xf32>
      %35 = arith.addf %31, %34 : vector<256x128xf32>
      %c2_i32 = arith.constant 2 : i32
      %36 = arith.cmpi slt, %arg0, %c2_i32 : i32
      %37 = arith.extui %36 : i1 to i32
      %c0_i32_21 = arith.constant 0 : i32
      %38 = arith.cmpi ne, %37, %c0_i32_21 : i32
      scf.if %38 {
        %cst_24 = arith.constant 0.000000e+00 : f32
        %42 = vector.broadcast %cst_24 : f32 to vector<256x128xf32>
        %43 = arith.maximumf %35, %42 : vector<256x128xf32>
        %44 = arith.truncf %43 : vector<256x128xf32> to vector<256x128xbf16>
        %45 = arith.index_cast %1 : i32 to index
        %c0_25 = arith.constant 0 : index
        %46 = vector.load %arg9[%45, %c0_25] : memref<256x128xbf16, #tpu.memory_space<vmem>>, vector<256x128xbf16>
        tpu.vector_store %arg9[%45, %c0_25], %44 {strides = array<i32>} : memref<256x128xbf16, #tpu.memory_space<vmem>>, vector<256x128xbf16>,
      } else {
      }
      %c2_i32_22 = arith.constant 2 : i32
      %39 = arith.cmpi eq, %arg0, %c2_i32_22 : i32
      %40 = arith.extui %39 : i1 to i32
      %c0_i32_23 = arith.constant 0 : i32
      %41 = arith.cmpi ne, %40, %c0_i32_23 : i32
      scf.if %41 {
        %c0_24 = arith.constant 0 : index
        %c0_25 = arith.constant 0 : index
        %42 = vector.load %arg7[%c0_24, %c0_25] : memref<256x128xf32, #tpu.memory_space<vmem>>, vector<256x128xf32>
        tpu.vector_store %arg7[%c0_24, %c0_25], %35 {strides = array<i32>} : memref<256x128xf32, #tpu.memory_space<vmem>>, vector<256x128xf32>,
      } else {
      }
    } else {
    }
    return
  }
  func.func @transform_1(%arg0: i32, %arg1: i32, %arg2: i32) -> (i32, i32) {
    %c0_i32 = arith.constant 0 : i32
    %0 = arith.cmpi eq, %arg0, %c0_i32 : i32
    %c0_i32_0 = arith.constant 0 : i32
    %1 = arith.cmpi eq, %arg1, %c0_i32_0 : i32
    %2 = arith.andi %0, %1 : i1
    %c0_i32_1 = arith.constant 0 : i32
    %3 = arith.select %2, %arg2, %c0_i32_1 : i32
    %c0_i32_2 = arith.constant 0 : i32
    %c0_i32_3 = arith.constant 0 : i32
    return %3, %c0_i32_2 : i32, i32
  }
  func.func @transform_2(%arg0: i32, %arg1: i32, %arg2: i32) -> (i32, i32, i32) {
    %c0_i32 = arith.constant 0 : i32
    %c0_i32_0 = arith.constant 0 : i32
    %c0_i32_1 = arith.constant 0 : i32
    return %arg0, %c0_i32, %c0_i32_0 : i32, i32, i32
  }
  func.func @transform_3(%arg0: i32, %arg1: i32, %arg2: i32) -> (i32, i32, i32) {
    %c0_i32 = arith.constant 0 : i32
    %c0_i32_0 = arith.constant 0 : i32
    %c0_i32_1 = arith.constant 0 : i32
    return %arg0, %c0_i32, %c0_i32_0 : i32, i32, i32
  }
  func.func @transform_4(%arg0: i32, %arg1: i32, %arg2: i32) -> (i32, i32) {
    %c2_i32 = arith.constant 2 : i32
    %0 = arith.cmpi eq, %arg0, %c2_i32 : i32
    %c0_i32 = arith.constant 0 : i32
    %1 = arith.select %0, %arg1, %c0_i32 : i32
    %c0_i32_0 = arith.constant 0 : i32
    %c0_i32_1 = arith.constant 0 : i32
    return %1, %c0_i32_0 : i32, i32
  }
}

</mosaic_0001>

<bundles_post_ra>
// kernel: tpu_custom_call.1
= control target key start
LH: loop header
LB: loop body
LE: loop exit
PB: predicated region body
PF: predicated region fallthrough
CT: control target
= control target key end

     0   :  { %9 = vsyncpa [#allocation8], 0  ;;  %s2911_s0 = inlined_call_operand.hbm [shape: bf16[1,256,256], index: 0, kind: input, shape index: {}]   ;;  %s2912_s1 = inlined_call_operand.hbm [shape: bf16[256,128], index: 1, kind: input, shape index: {}]   ;;  %s2913_s2 = inlined_call_operand.hbm [shape: bf16[3,128,128], index: 2, kind: input, shape index: {}]   ;;  %s2914_s3 = inlined_call_operand.vmem [shape: f32[3,1,128], index: 3, kind: input, shape index: {}]   ;;  %s2915_s4 = inlined_call_operand.hbm [shape: f32[256,128], index: 4, kind: output, shape index: {}]  }
   0x1   :  { %11 = vsyncpa [#allocation8 + $0x1], 0 }
   0x2   :  { %12 = vsyncpa [#allocation11], 0 }
   0x3   :  { %14 = vsyncpa [#allocation11 + $0x1], 0 }
   0x4   :  { %15 = vsyncpa [#allocation9], 0 }
   0x5   :  { %17 = vsyncpa [#allocation9 + $0x1], 0  ;;  %s2393_s15 = smov 0   ;;  %s2395_s16 = smov 0  }
   0x6   :  { %s2397_s17 = smov 0   ;;  %s2399_s18 = smov 0  }
   0x7   :  { %s2401_s19 = smov 0   ;;  %s2403_s20 = smov 0  }
   0x8 LB: > { %s1702_s21 = sadd.s32 4294967295, %s2351_s20   ;;  %p92_p0 = scmp.ne.s32.totalorder %s2339_s17, %s2335_s16  ;;  %s2351_s20 = sphi %s2403_s20, %s23_s20   ;;  %s2347_s19 = sphi %s2401_s19, %s2936_s19   ;;  %s2343_s18 = sphi %s2399_s18, %s2935_s18   ;;  %s2339_s17 = sphi %s2397_s17, %s2934_s17   ;;  %s2335_s16 = sphi %s2395_s16, %s2933_s16   ;;  %s2331_s15 = sphi %s2393_s15, %s2932_s15  }
   0x9   : > { %p93_p1 = scmp.eq.s32.totalorder %s2351_s20, 0  ;;  %p98_p2 = scmp.ne.s32.totalorder %s2335_s16, %s2331_s15 }
   0xa   : > { %p2429_p3 = scmp.eq.s32.totalorder %s1702_s21, 0  ;;  %p2916_p6 = scmp.lt.s32.totalorder %s2351_s20, 3 }
   0xb   : > { %p2433_p4 = por %p93_p1, %p92_p0  ;;  %s2353_s26 = smov [#allocation7]  }
   0xc   : > { %s2920_s23 = scalar_select %p2429_p3, 1, 0 }
   0xd   : > { %s2921_s24 = scalar_select %p2433_p4, 1, 0 }
   0xe   : > { %p2439_p5 = por %p2429_p3, %p98_p2  ;;  %s194_s27 = sshll.u32 %s2353_s26, 4  ;;  %s195_s27 = int_to_ptr.vmem [resolvable:$true] %s194_s27 }
   0xf   : > { %p2446_p7 = pnand %p2916_p6, %p93_p1  ;;  %s2205_s5 = scalar_lea.hbm %s2912_s1, 2048 }
  0x10   : > { %s2922_s25 = scalar_select %p2439_p5, 1, 0 }
  0x11   : > { %p2206_p8 = scmp.ne.s32.totalorder %s2912_s1, %s2205_s5  ;;  %p2207_p9 = pneg %p2446_p7 }
  0x12   : > { %p2212_p12 = scmp.lt.u32.totalorder %s2205_s5, %s2912_s1 }
  0x13   : > { %p2208_p10 = pnand %p2207_p9, %p2206_p8 }
  0x15   : > { %p2209_p11 = pneg %p2208_p10 }
  0x17   : > { %p2214_p13 = pnand %p2212_p12, %p2209_p11 }
  0x19   : > { %2217 = shalt.err (!%p2214_p13)
}
  0x1a   : > { %s2218_s10 = scalar_lea.vmem %s195_s27, 2048  ;;  %s2225_s11 = scalar_lea.vmem %s195_s27, 4096 }
  0x1b   : > { %p2219_p0 = scmp.ne.s32.totalorder %s195_s27, %s2218_s10  ;;  %p2226_p6 = scmp.lt.s32.totalorder %s195_s27, %s195_s27 }
  0x1c   : > { %p2227_p5 = scmp.lt.s32.totalorder %s2225_s11, %s2218_s10 }
  0x1d   : > { %p2221_p1 = pnand %p2219_p0, %p2207_p9 }
  0x1e   : > { %p2228_p3 = por %p2227_p5, %p2226_p6 }
  0x1f   : > { %p2222_p2 = pneg %p2221_p1 }
  0x21   : > { %p2229_p4 = pnand %p2228_p3, %p2222_p2 }
  0x23   : > { %2232 = shalt.err (!%p2229_p4)
}
  0x24   : > { %s2354_s12 = smov 64   ;;  %s2355_s13 = smov 4  }
  0x25   : > { %2097 = dma.hbm_to_vmem [thread:$0]  (!%p2446_p7), %s2912_s1, 2048, %s195_s27, [#allocation8], %s2354_s12, %s2354_s12, %s2355_s13  }
  0x26   : > { %p2924_p3 = scmp.ne.s32.totalorder %s2921_s24, 0  ;;  %p2925_p4 = scmp.lt.s32.totalorder %s2351_s20, 3 }
  0x27   : > { %p1713_p6 = scmp.ge.s32.totalorder %s2351_s20, 1  ;;  %p229_p8 = scmp.lt.s32.totalorder %s2351_s20, 4 }
  0x28   : > { %p2473_p5 = pnand %p2925_p4, %p2924_p3  ;;  %s42_s28 = sadd.s32 1, %s2347_s19 }
  0x29   : > { %p2479_p9 = pnand %p1713_p6, %p229_p8  ;;  %p44_p10 = scmp.ge.s32.totalorder %s42_s28, 3 }
  0x2a   : > { %s85_s30 = sadd.s32 1, %s2339_s17  ;;  %s204_s5 = sand.u32 1, %s2339_s17  }
  0x2b   : > { %s2938_s28 = smov (%p44_p10, %s42_s28), 0  ;;  %s1710_s24 = sshll.u32 %s204_s5, 6 }
  0x2c   : > { %s1765_s27 = sshll.u32 %s2347_s19, 10  ;;  %s82_s6 = ssub.s32 %s2347_s19, %s2938_s28 }
  0x2d   : > { %p83_p7 = scmp.eq.s32.totalorder %s82_s6, 0  ;;  %s2494_s9 = scalar_lea.hbm %s2913_s2, %s1765_s27 }
  0x2e   : > { %s208_s10 = scalar_lea.vmem [#allocation10], %s1710_s24  ;;  %s2501_s15 = scalar_lea.sflag [#allocation11], %s204_s5 }
  0x2f   : > { %s215_s11 = sshll.u32 %s208_s10, 4  ;;  %s2233_s22 = scalar_lea.hbm %s2494_s9, 1024  ;;  %s2499_s11 = int_to_ptr.vmem [resolvable:$true] %s215_s11 }
  0x30   : > { %s2497_s14 = scalar_select %p83_p7, %s2339_s17, %s85_s30  }
  0x31   : > { %p2234_p11 = scmp.ne.s32.totalorder %s2494_s9, %s2233_s22  ;;  %p2235_p12 = pneg %p2473_p5 }
  0x32   : > { %s2238_s7 = scalar_lea.hbm %s2913_s2, 3072  ;;  %p2239_p1 = scmp.lt.u32.totalorder %s2494_s9, %s2913_s2 }
  0x33   : > { %p2236_p13 = pnand %p2235_p12, %p2234_p11  ;;  %p2240_p2 = scmp.lt.u32.totalorder %s2238_s7, %s2233_s22 }
  0x34   : > { %p2242_p4 = scmp.lt.u32.totalorder %s2233_s22, %s2494_s9 }
  0x35   : > { %p2237_p0 = pneg %p2236_p13  ;;  %p2241_p3 = por %p2240_p2, %p2239_p1 }
  0x37   : > { %p2243_p6 = por %p2242_p4, %p2241_p3 }
  0x39   : > { %p2244_p8 = pnand %p2243_p6, %p2237_p0 }
  0x3b   : > { %2247 = shalt.err (!%p2244_p8)
}
  0x3c   : > { %s2248_s30 = scalar_lea.vmem %s2499_s11, 1024  ;;  %s2356_s5 = smov [#allocation10]  }
  0x3d   : > { %p2249_p10 = scmp.ne.s32.totalorder %s2499_s11, %s2248_s30  ;;  %s2253_s10 = sshll.u32 %s2356_s5, 4  ;;  %s2254_s10 = int_to_ptr.vmem [resolvable:$false] %s2253_s10 }
  0x3e   : > { %s2255_s27 = scalar_lea.vmem %s2254_s10, 2048  ;;  %p2256_p13 = scmp.lt.s32.totalorder %s2499_s11, %s2254_s10 }
  0x3f   : > { %p2251_p7 = pnand %p2249_p10, %p2235_p12  ;;  %p2257_p1 = scmp.lt.s32.totalorder %s2255_s27, %s2248_s30 }
  0x41   : > { %p2252_p11 = pneg %p2251_p7  ;;  %p2258_p2 = por %p2257_p1, %p2256_p13 }
  0x43   : > { %p2259_p3 = pnand %p2258_p2, %p2252_p11 }
  0x45   : > { %2262 = shalt.err (!%p2259_p3)
}
  0x46   : > { %2100 = dma.hbm_to_vmem [thread:$0]  (!%p2473_p5), %s2494_s9, 1024, %s2499_s11, %s2501_s15, %s2354_s12, %s2354_s12, %s2355_s13  }
  0x47   : > { %233 = sbr.rel (%p2479_p9) target bundleno = 1020 (0x3fc), region = 32  ;;  %p2928_p12 = scmp.ne.s32.totalorder (!%p2479_p9), %s2920_s23, 0 }
  0x4e   : > { %2314 = dma.done.wait (%p2928_p12), [#allocation8], 2048  }
  0x4f   : > { %2316 = vsyncadd (%p2928_p12), [#allocation8], 4294965248  ;;  %s244_s22 = sand.u32 1, %s2335_s16   ;;  %p2929_p0 = scmp.ne.s32.totalorder %s2922_s25, 0 }
  0x50   : > { %s1715_s26 = sshll.u32 %s244_s22, 6  ;;  %s245_s6 = scalar_lea.sflag [#allocation11], %s244_s22 }
  0x51   : > { %s2539_s7 = scalar_lea.vmem [#allocation10], %s1715_s26 }
  0x52   : > { %2318 = dma.done.wait (%p2929_p0), %s245_s6, 1024  }
  0x53   : > { %2320 = vsyncadd (%p2929_p0), %s245_s6, 4294966272  ;;  %p285_p5 = scmp.lt.s32.totalorder %s2343_s18, 2  ;;  %p294_p9 = scmp.eq.s32.totalorder %s2343_s18, 0 }
  0x55   : > { %s2548_s12 = scalar_select %p285_p5, %s2343_s18, 2 }
  0x57   : > { %s287_s29 = scalar_lea.vmem %s2914_s3, %s2548_s12 }
  0x58   : > { %s2078_s25 = scalar_select %p294_p9, [#allocation0], [#allocation15] }
  0x59   : > { %s2357_s11 = smov [#allocation5]   ;;  %s2358_s24 = smov 256  }
  0x5a   : > { %s307_s9 = sld [smem:[%s2078_s25]]   ;;  %s315_s15 = sshll.u32 %s2357_s11, 4  ;;  %s316_s15 = int_to_ptr.vmem [resolvable:$true] %s315_s15 }
  0x5b   : > { %2079 = sst [smem:[#allocation14]] (%p294_p9), %s2358_s24  ;;  %s2359_s8 = smov 2  }
  0x5c   : > { %2080 = sst [smem:[#allocation14 + $0x1]] (%p294_p9), %s2358_s24  ;;  %s2360_s30 = smov 64  }
  0x5d   : > { %2081 = sst [smem:[#allocation14 + $0x2]] (%p294_p9), %s2359_s8  ;;  %s2361_s5 = smov 128  }
  0x5e   : > { %2082 = sst [smem:[#allocation14 + $0x3]] (%p294_p9), %s2360_s30  ;;  %s2362_s22 = smov 4  }
  0x5f   : > { %2083 = sst [smem:[#allocation14 + $0x4]] (%p294_p9), %s2361_s5  ;;  %s2363_s26 = smov [#allocation6]  }
  0x60   : > { %s1718_s10 = sshll.u32 %s307_s9, 26  ;;  %2084 = sst [smem:[#allocation14 + $0x5]] (%p294_p9), %s2359_s8 }
  0x61   : > { %s1719_s27 = sadd.s32 134217728, %s1718_s10  ;;  %2085 = sst [smem:[#allocation14 + $0x6]] (%p294_p9), %s2361_s5 }
  0x62   : > { %2086 = sst [smem:[#allocation14 + $0x7]] (%p294_p9), %s2360_s30  ;;  %s2364_s6 = smov [#allocation13]  }
  0x63   : > { %2087 = sst [smem:[#allocation14 + $0x8]] (%p294_p9), %s2362_s22 }
  0x64   : > { %2088 = dma.general (%p294_p9), %s2911_s0, 4096, %s316_s15, %s2363_s26, %s2364_s6, [#allocation14], %s1719_s27, 0  }
  0x65   : > { %2322 = dma.done.wait (%p294_p9), [#allocation6], 4096 }
  0x66   : > { %2324 = vsyncadd (%p294_p9), [#allocation6], 4294963200  ;;  %v2583_v0 = vld [vmem:[#allocation5] sm:$0xff]  ;;  %v2585_v1 = vld [vmem:[#allocation5 + $0x8] sm:$0xff]  ;;  %p1720_p4 = scmp.ne.s32.totalorder %s2343_s18, 0 }
  0x67   : > { %v2587_v2 = vld [vmem:[#allocation5 + $0x10] sm:$0xff]  ;;  %v2589_v3 = vld [vmem:[#allocation5 + $0x18] sm:$0xff]  ;;  %v2591_v4 = vld [vmem:[#allocation5 + $0x20] sm:$0xff] }
  0x68   : > { %v2593_v5 = vld [vmem:[#allocation5 + $0x28] sm:$0xff]  ;;  %v2595_v6 = vld [vmem:[#allocation5 + $0x30] sm:$0xff]  ;;  %v2597_v7 = vld [vmem:[#allocation5 + $0x38] sm:$0xff] }
  0x69   : > { %v2599_v8 = vld [vmem:[#allocation5 + $0x40] sm:$0xff]  ;;  %v2601_v9 = vld [vmem:[#allocation5 + $0x48] sm:$0xff]  ;;  %v2603_v10 = vld [vmem:[#allocation5 + $0x50] sm:$0xff] }
  0x6a   : > { %v2605_v11 = vld [vmem:[#allocation5 + $0x58] sm:$0xff]  ;;  %v2607_v12 = vld [vmem:[#allocation5 + $0x60] sm:$0xff]  ;;  %v2609_v13 = vld [vmem:[#allocation5 + $0x68] sm:$0xff]  ;;  %384 = sbr.rel (%p1720_p4) target bundleno = 388 (0x184), region = 52 }
  0x6b   : > { %v2611_v14 = vld [vmem:[#allocation5 + $0x70] sm:$0xff]  ;;  %v2613_v15 = vld [vmem:[#allocation5 + $0x78] sm:$0xff]  ;;  %v2615_v16 = vld [vmem:[#allocation5 + $0x80] sm:$0xff] }
  0x6c   : > { %v2617_v17 = vld [vmem:[#allocation5 + $0x88] sm:$0xff]  ;;  %v2619_v18 = vld [vmem:[#allocation5 + $0x90] sm:$0xff]  ;;  %v2621_v19 = vld [vmem:[#allocation5 + $0x98] sm:$0xff] }
  0x6d   : > { %v2623_v20 = vld [vmem:[#allocation5 + $0xa0] sm:$0xff]  ;;  %v2625_v21 = vld [vmem:[#allocation5 + $0xa8] sm:$0xff]  ;;  %v2627_v22 = vld [vmem:[#allocation5 + $0xb0] sm:$0xff] }
  0x6e   : > { %v2629_v23 = vld [vmem:[#allocation5 + $0xb8] sm:$0xff]  ;;  %v2631_v24 = vld [vmem:[#allocation5 + $0xc0] sm:$0xff]  ;;  %v2633_v25 = vld [vmem:[#allocation5 + $0xc8] sm:$0xff] }
  0x6f   : > { %v2635_v26 = vld [vmem:[#allocation5 + $0xd0] sm:$0xff]  ;;  %v2637_v27 = vld [vmem:[#allocation5 + $0xd8] sm:$0xff]  ;;  %v2639_v28 = vld [vmem:[#allocation5 + $0xe0] sm:$0xff] }
  0x70   : > { %v2641_v29 = vld [vmem:[#allocation5 + $0xe8] sm:$0xff]  ;;  %v2643_v30 = vld [vmem:[#allocation5 + $0xf0] sm:$0xff]  ;;  %v2645_v31 = vld [vmem:[#allocation5 + $0xf8] sm:$0xff] }
  0x71   : > { %v2173_v32 = vld [vmem:[%s2539_s7] sm:$0xff]   ;;  %v2174_v33 = vld [vmem:[%s2539_s7 + $0x8] sm:$0xff]   ;;  %v2175_v34 = vld [vmem:[%s2539_s7 + $0x10] sm:$0xff]  }
  0x72   : > { %1928 = vmatprep.subr.bf16.mxu0 %v2173_v32  ;;  %2024 = vmatprep.subr.bf16.mxu1 %v2173_v32  ;;  %v2176_v35 = vld [vmem:[%s2539_s7 + $0x18] sm:$0xff]   ;;  %v2181_v36 = vld [vmem:[#allocation7] sm:$0xff]   ;;  %v2178_v39 = vld [vmem:[%s2539_s7 + $0x28] sm:$0xff]  }
  0x73   : > { %1929 = vmatpush3.bf16.msra.mxu0 %v2173_v32  ;;  %2032 = vmatpush3.bf16.msra.mxu1 %v2173_v32  ;;  %v2182_v37 = vld [vmem:[#allocation7 + $0x40] sm:$0xff]   ;;  %v2179_v40 = vld [vmem:[%s2539_s7 + $0x30] sm:$0xff]   ;;  %v2180_v41 = vld [vmem:[%s2539_s7 + $0x38] sm:$0xff]  }
  0x74   : > { %1930 = vmatprep.subr.bf16.mxu0 %v2174_v33  ;;  %2025 = vmatprep.subr.bf16.mxu1 %v2174_v33  ;;  %v2177_v38 = vld [vmem:[%s2539_s7 + $0x20] sm:$0xff]   ;;  %v2183_v42 = vld [vmem:[#allocation7 + $0x8] sm:$0xff]   ;;  %v2185_v44 = vld [vmem:[#allocation7 + $0x10] sm:$0xff]  }
  0x75   : > { %1944 = vmatprep.mubr.bf16.mxu0 %v2181_v36  ;;  %1960 = vmatprep.mubr.bf16.mxu1 %v2182_v37  ;;  %v2184_v43 = vld [vmem:[#allocation7 + $0x48] sm:$0xff]   ;;  %v2186_v45 = vld [vmem:[#allocation7 + $0x50] sm:$0xff]   ;;  %v2187_v46 = vld [vmem:[#allocation7 + $0x18] sm:$0xff]  }
  0x76   : > { %v2188_v47 = vld [vmem:[#allocation7 + $0x58] sm:$0xff]   ;;  %v2189_v48 = vld [vmem:[#allocation7 + $0x20] sm:$0xff]   ;;  %v2191_v50 = vld [vmem:[#allocation7 + $0x28] sm:$0xff]  }
  0x77   : > { %1931 = vmatpush3.bf16.msra.mxu0 %v2174_v33  ;;  %2033 = vmatpush3.bf16.msra.mxu1 %v2174_v33  ;;  %v2190_v49 = vld [vmem:[#allocation7 + $0x60] sm:$0xff]   ;;  %v2192_v51 = vld [vmem:[#allocation7 + $0x68] sm:$0xff]   ;;  %v2193_v52 = vld [vmem:[#allocation7 + $0x30] sm:$0xff]  }
  0x78   : > { %1932 = vmatprep.subr.bf16.mxu0 %v2175_v34  ;;  %2026 = vmatprep.subr.bf16.mxu1 %v2175_v34  ;;  %v2194_v53 = vld [vmem:[#allocation7 + $0x70] sm:$0xff]   ;;  %v2195_v54 = vld [vmem:[#allocation7 + $0x38] sm:$0xff]  }
  0x79   : > { %v2196_v55 = vld [vmem:[#allocation7 + $0x78] sm:$0xff]  }
  0x7b   : > { %1933 = vmatpush3.bf16.msra.mxu0 %v2175_v34  ;;  %2034 = vmatpush3.bf16.msra.mxu1 %v2175_v34 }
  0x7c   : > { %1934 = vmatprep.subr.bf16.mxu0 %v2176_v35  ;;  %2027 = vmatprep.subr.bf16.mxu1 %v2176_v35 }
  0x7f   : > { %1935 = vmatpush3.bf16.msra.mxu0 %v2176_v35  ;;  %2035 = vmatpush3.bf16.msra.mxu1 %v2176_v35 }
  0x80   : > { %1936 = vmatprep.subr.bf16.mxu0 %v2177_v38  ;;  %2028 = vmatprep.subr.bf16.mxu1 %v2177_v38 }
  0x83   : > { %1937 = vmatpush3.bf16.msra.mxu0 %v2177_v38  ;;  %2036 = vmatpush3.bf16.msra.mxu1 %v2177_v38 }
  0x84   : > { %1938 = vmatprep.subr.bf16.mxu0 %v2178_v39  ;;  %2029 = vmatprep.subr.bf16.mxu1 %v2178_v39 }
  0x87   : > { %1939 = vmatpush3.bf16.msra.mxu0 %v2178_v39  ;;  %2037 = vmatpush3.bf16.msra.mxu1 %v2178_v39 }
  0x88   : > { %1940 = vmatprep.subr.bf16.mxu0 %v2179_v40  ;;  %2030 = vmatprep.subr.bf16.mxu1 %v2179_v40 }
  0x8b   : > { %1941 = vmatpush3.bf16.msra.mxu0 %v2179_v40  ;;  %2038 = vmatpush3.bf16.msra.mxu1 %v2179_v40 }
  0x8c   : > { %1942 = vmatprep.subr.bf16.mxu0 %v2180_v41  ;;  %2031 = vmatprep.subr.bf16.mxu1 %v2180_v41 }
  0x8f   : > { %1943 = vmatpush3.bf16.msra.mxu0 %v2180_v41  ;;  %2039 = vmatpush3.bf16.msra.mxu1 %v2180_v41 }
  0x92   : > { %1945 = vmatmul.mubr.bf16.vlgmr.msra.gmra.mrb[0].mxu0 %v2183_v42  ;;  %1961 = vmatmul.mubr.bf16.vlgmr.msra.gmra.mrb[0].mxu1 %v2184_v43 }
  0x93   : > { %1948 = vmatprep.mubr.bf16.mxu0 %v2185_v44  ;;  %1964 = vmatprep.mubr.bf16.mxu1 %v2186_v45 }
  0x9a   : > { %1949 = vmatmul.mubr.bf16.gmra.mrb[4].mxu0 %v2187_v46  ;;  %1965 = vmatmul.mubr.bf16.gmra.mrb[4].mxu1 %v2188_v47 }
  0x9b   : > { %1952 = vmatprep.mubr.bf16.mxu0 %v2189_v48  ;;  %1968 = vmatprep.mubr.bf16.mxu1 %v2190_v49 }
  0xa2   : > { %1953 = vmatmul.mubr.bf16.gmra.mrb[8].mxu0 %v2191_v50  ;;  %1969 = vmatmul.mubr.bf16.gmra.mrb[8].mxu1 %v2192_v51 }
  0xa3   : > { %1956 = vmatprep.mubr.bf16.mxu0 %v2193_v52  ;;  %1972 = vmatprep.mubr.bf16.mxu1 %v2194_v53 }
  0xaa   : > { %1957 = vmatmul.mubr.bf16.gmra.mrb[12].mxu0 %v2195_v54  ;;  %1973 = vmatmul.mubr.bf16.gmra.mrb[12].mxu1 %v2196_v55 }
 0x165   : > { %v1946_v56 = vpop.f32.mrb[0].mxu0  ;;  %v1962_v57 = vpop.f32.mrb[0].mxu1 }
 0x166   : > { %v611_v58 = vpop.f32.mrb[1].mxu0  ;;  %v675_v59 = vpop.f32.mrb[1].mxu1 }
 0x167   : > { %v1947_v60 = vpop.f32.mrb[2].mxu0  ;;  %v1963_v61 = vpop.f32.mrb[2].mxu1 }
 0x168   : > { %v739_v62 = vpack.c.bf16 %v1947_v60, %v1946_v56  ;;  %v747_v63 = vpack.c.bf16 %v1963_v61, %v1962_v57  ;;  %v614_v32 = vpop.f32.mrb[3].mxu0  ;;  %v678_v33 = vpop.f32.mrb[3].mxu1 }
 0x169   : > { %v738_v34 = vpack.c.bf16 %v614_v32, %v611_v58  ;;  %v746_v35 = vpack.c.bf16 %v678_v33, %v675_v59 }
 0x16a   : > { %759 = vst [vmem:[#allocation4 + $0x8] sm:$0xff] %v739_v62  ;;  %767 = vst [vmem:[#allocation4 + $0x48] sm:$0xff] %v747_v63 }
 0x16b   : > { %758 = vst [vmem:[#allocation4] sm:$0xff] %v738_v34  ;;  %766 = vst [vmem:[#allocation4 + $0x40] sm:$0xff] %v746_v35 }
 0x16d   : > { %v1950_v36 = vpop.f32.mrb[4].mxu0  ;;  %v1966_v37 = vpop.f32.mrb[4].mxu1 }
 0x16e   : > { %v627_v38 = vpop.f32.mrb[5].mxu0  ;;  %v691_v39 = vpop.f32.mrb[5].mxu1 }
 0x16f   : > { %v1951_v40 = vpop.f32.mrb[6].mxu0  ;;  %v1967_v41 = vpop.f32.mrb[6].mxu1 }
 0x170   : > { %v741_v42 = vpack.c.bf16 %v1951_v40, %v1950_v36  ;;  %v749_v43 = vpack.c.bf16 %v1967_v41, %v1966_v37  ;;  %v630_v44 = vpop.f32.mrb[7].mxu0  ;;  %v694_v45 = vpop.f32.mrb[7].mxu1 }
 0x171   : > { %v740_v46 = vpack.c.bf16 %v630_v44, %v627_v38  ;;  %v748_v47 = vpack.c.bf16 %v694_v45, %v691_v39 }
 0x172   : > { %761 = vst [vmem:[#allocation4 + $0x18] sm:$0xff] %v741_v42  ;;  %769 = vst [vmem:[#allocation4 + $0x58] sm:$0xff] %v749_v43 }
 0x173   : > { %760 = vst [vmem:[#allocation4 + $0x10] sm:$0xff] %v740_v46  ;;  %768 = vst [vmem:[#allocation4 + $0x50] sm:$0xff] %v748_v47 }
 0x175   : > { %v1954_v48 = vpop.f32.mrb[8].mxu0  ;;  %v1970_v49 = vpop.f32.mrb[8].mxu1 }
 0x176   : > { %v643_v50 = vpop.f32.mrb[9].mxu0  ;;  %v707_v51 = vpop.f32.mrb[9].mxu1 }
 0x177   : > { %v1955_v52 = vpop.f32.mrb[10].mxu0  ;;  %v1971_v53 = vpop.f32.mrb[10].mxu1 }
 0x178   : > { %v743_v54 = vpack.c.bf16 %v1955_v52, %v1954_v48  ;;  %v751_v55 = vpack.c.bf16 %v1971_v53, %v1970_v49  ;;  %v646_v56 = vpop.f32.mrb[11].mxu0  ;;  %v710_v57 = vpop.f32.mrb[11].mxu1 }
 0x179   : > { %v742_v58 = vpack.c.bf16 %v646_v56, %v643_v50  ;;  %v750_v59 = vpack.c.bf16 %v710_v57, %v707_v51 }
 0x17a   : > { %763 = vst [vmem:[#allocation4 + $0x28] sm:$0xff] %v743_v54  ;;  %771 = vst [vmem:[#allocation4 + $0x68] sm:$0xff] %v751_v55 }
 0x17b   : > { %762 = vst [vmem:[#allocation4 + $0x20] sm:$0xff] %v742_v58  ;;  %770 = vst [vmem:[#allocation4 + $0x60] sm:$0xff] %v750_v59 }
 0x17d   : > { %v1958_v60 = vpop.f32.mrb[12].mxu0  ;;  %v1974_v61 = vpop.f32.mrb[12].mxu1 }
 0x17e   : > { %v659_v62 = vpop.f32.mrb[13].mxu0  ;;  %v723_v63 = vpop.f32.mrb[13].mxu1 }
 0x17f   : > { %v1959_v32 = vpop.f32.mrb[14].mxu0  ;;  %v1975_v33 = vpop.f32.mrb[14].mxu1 }
 0x180   : > { %v745_v34 = vpack.c.bf16 %v1959_v32, %v1958_v60  ;;  %v753_v35 = vpack.c.bf16 %v1975_v33, %v1974_v61  ;;  %v662_v36 = vpop.f32.mrb[15].mxu0  ;;  %v726_v37 = vpop.f32.mrb[15].mxu1 }
 0x181   : > { %v744_v38 = vpack.c.bf16 %v662_v36, %v659_v62  ;;  %v752_v39 = vpack.c.bf16 %v726_v37, %v723_v63 }
 0x182   : > { %765 = vst [vmem:[#allocation4 + $0x38] sm:$0xff] %v745_v34  ;;  %773 = vst [vmem:[#allocation4 + $0x78] sm:$0xff] %v753_v35 }
 0x183   : > { %764 = vst [vmem:[#allocation4 + $0x30] sm:$0xff] %v744_v38  ;;  %772 = vst [vmem:[#allocation4 + $0x70] sm:$0xff] %v752_v39 }
 0x184 PF: > { %p1745_p6 = scmp.le.s32.totalorder %s2343_s18, 0 }
 0x185   : > { %v2197_v40 = vld [vmem:[%s2539_s7] sm:$0xff] (!%p1745_p6)   ;;  %v2198_v41 = vld [vmem:[%s2539_s7 + $0x8] sm:$0xff] (!%p1745_p6)   ;;  %v2199_v42 = vld [vmem:[%s2539_s7 + $0x10] sm:$0xff] (!%p1745_p6)  }
 0x186   : > { %777 = sbr.rel (%p1745_p6) target bundleno = 664 (0x298), region = 56  ;;  %1976 = vmatprep.subr.bf16.mxu0 (!%p1745_p6), %v2197_v40  ;;  %2040 = vmatprep.subr.bf16.mxu1 (!%p1745_p6), %v2197_v40  ;;  %v2200_v43 = vld [vmem:[%s2539_s7 + $0x18] sm:$0xff] (!%p1745_p6)   ;;  %v782_v44 = vld [vmem:[#allocation3] sm:$0xff] (!%p1745_p6)  ;;  %v2202_v47 = vld [vmem:[%s2539_s7 + $0x28] sm:$0xff] (!%p1745_p6)  }
 0x187   : > { %1977 = vmatpush3.bf16.msra.mxu0 (!%p1745_p6), %v2197_v40  ;;  %2048 = vmatpush3.bf16.msra.mxu1 (!%p1745_p6), %v2197_v40  ;;  %v790_v45 = vld [vmem:[#allocation3 + $0x40] sm:$0xff] (!%p1745_p6)  ;;  %v2203_v48 = vld [vmem:[%s2539_s7 + $0x30] sm:$0xff] (!%p1745_p6)   ;;  %v2204_v49 = vld [vmem:[%s2539_s7 + $0x38] sm:$0xff] (!%p1745_p6)  }
 0x188   : > { %1978 = vmatprep.subr.bf16.mxu0 (!%p1745_p6), %v2198_v41  ;;  %2041 = vmatprep.subr.bf16.mxu1 (!%p1745_p6), %v2198_v41  ;;  %v2201_v46 = vld [vmem:[%s2539_s7 + $0x20] sm:$0xff] (!%p1745_p6)   ;;  %v783_v50 = vld [vmem:[#allocation3 + $0x8] sm:$0xff] (!%p1745_p6)  ;;  %v784_v52 = vld [vmem:[#allocation3 + $0x10] sm:$0xff] (!%p1745_p6) }
 0x189   : > { %1992 = vmatprep.mubr.bf16.mxu0 (!%p1745_p6), %v782_v44  ;;  %2008 = vmatprep.mubr.bf16.mxu1 (!%p1745_p6), %v790_v45  ;;  %v791_v51 = vld [vmem:[#allocation3 + $0x48] sm:$0xff] (!%p1745_p6)  ;;  %v792_v53 = vld [vmem:[#allocation3 + $0x50] sm:$0xff] (!%p1745_p6)  ;;  %v785_v54 = vld [vmem:[#allocation3 + $0x18] sm:$0xff] (!%p1745_p6) }
 0x18a   : > { %v793_v55 = vld [vmem:[#allocation3 + $0x58] sm:$0xff] (!%p1745_p6)  ;;  %v786_v56 = vld [vmem:[#allocation3 + $0x20] sm:$0xff] (!%p1745_p6)  ;;  %v787_v58 = vld [vmem:[#allocation3 + $0x28] sm:$0xff] (!%p1745_p6) }
 0x18b   : > { %1979 = vmatpush3.bf16.msra.mxu0 (!%p1745_p6), %v2198_v41  ;;  %2049 = vmatpush3.bf16.msra.mxu1 (!%p1745_p6), %v2198_v41  ;;  %v794_v57 = vld [vmem:[#allocation3 + $0x60] sm:$0xff] (!%p1745_p6)  ;;  %v795_v59 = vld [vmem:[#allocation3 + $0x68] sm:$0xff] (!%p1745_p6)  ;;  %v788_v60 = vld [vmem:[#allocation3 + $0x30] sm:$0xff] (!%p1745_p6) }
 0x18c   : > { %1980 = vmatprep.subr.bf16.mxu0 (!%p1745_p6), %v2199_v42  ;;  %2042 = vmatprep.subr.bf16.mxu1 (!%p1745_p6), %v2199_v42  ;;  %v796_v61 = vld [vmem:[#allocation3 + $0x70] sm:$0xff] (!%p1745_p6)  ;;  %v789_v62 = vld [vmem:[#allocation3 + $0x38] sm:$0xff] (!%p1745_p6) }
 0x18d   : > { %v797_v63 = vld [vmem:[#allocation3 + $0x78] sm:$0xff] }
 0x18f   : > { %1981 = vmatpush3.bf16.msra.mxu0 %v2199_v42  ;;  %2050 = vmatpush3.bf16.msra.mxu1 %v2199_v42 }
 0x190   : > { %1982 = vmatprep.subr.bf16.mxu0 %v2200_v43  ;;  %2043 = vmatprep.subr.bf16.mxu1 %v2200_v43 }
 0x193   : > { %1983 = vmatpush3.bf16.msra.mxu0 %v2200_v43  ;;  %2051 = vmatpush3.bf16.msra.mxu1 %v2200_v43 }
 0x194   : > { %1984 = vmatprep.subr.bf16.mxu0 %v2201_v46  ;;  %2044 = vmatprep.subr.bf16.mxu1 %v2201_v46 }
 0x197   : > { %1985 = vmatpush3.bf16.msra.mxu0 %v2201_v46  ;;  %2052 = vmatpush3.bf16.msra.mxu1 %v2201_v46 }
 0x198   : > { %1986 = vmatprep.subr.bf16.mxu0 %v2202_v47  ;;  %2045 = vmatprep.subr.bf16.mxu1 %v2202_v47 }
 0x19b   : > { %1987 = vmatpush3.bf16.msra.mxu0 %v2202_v47  ;;  %2053 = vmatpush3.bf16.msra.mxu1 %v2202_v47 }
 0x19c   : > { %1988 = vmatprep.subr.bf16.mxu0 %v2203_v48  ;;  %2046 = vmatprep.subr.bf16.mxu1 %v2203_v48 }
 0x19f   : > { %1989 = vmatpush3.bf16.msra.mxu0 %v2203_v48  ;;  %2054 = vmatpush3.bf16.msra.mxu1 %v2203_v48 }
 0x1a0   : > { %1990 = vmatprep.subr.bf16.mxu0 %v2204_v49  ;;  %2047 = vmatprep.subr.bf16.mxu1 %v2204_v49 }
 0x1a3   : > { %1991 = vmatpush3.bf16.msra.mxu0 %v2204_v49  ;;  %2055 = vmatpush3.bf16.msra.mxu1 %v2204_v49 }
 0x1a6   : > { %1993 = vmatmul.mubr.bf16.vlgmr.msra.gmra.mrb[0].mxu0 %v783_v50  ;;  %2009 = vmatmul.mubr.bf16.vlgmr.msra.gmra.mrb[0].mxu1 %v791_v51 }
 0x1a7   : > { %1996 = vmatprep.mubr.bf16.mxu0 %v784_v52  ;;  %2012 = vmatprep.mubr.bf16.mxu1 %v792_v53 }
 0x1ae   : > { %1997 = vmatmul.mubr.bf16.gmra.mrb[4].mxu0 %v785_v54  ;;  %2013 = vmatmul.mubr.bf16.gmra.mrb[4].mxu1 %v793_v55 }
 0x1af   : > { %2000 = vmatprep.mubr.bf16.mxu0 %v786_v56  ;;  %2016 = vmatprep.mubr.bf16.mxu1 %v794_v57 }
 0x1b6   : > { %2001 = vmatmul.mubr.bf16.gmra.mrb[8].mxu0 %v787_v58  ;;  %2017 = vmatmul.mubr.bf16.gmra.mrb[8].mxu1 %v795_v59 }
 0x1b7   : > { %2004 = vmatprep.mubr.bf16.mxu0 %v788_v60  ;;  %2020 = vmatprep.mubr.bf16.mxu1 %v796_v61 }
 0x1be   : > { %2005 = vmatmul.mubr.bf16.gmra.mrb[12].mxu0 %v789_v62  ;;  %2021 = vmatmul.mubr.bf16.gmra.mrb[12].mxu1 %v797_v63 }
 0x279   : > { %v1994_v32 = vpop.f32.mrb[0].mxu0  ;;  %v2010_v33 = vpop.f32.mrb[0].mxu1 }
 0x27a   : > { %v896_v34 = vpop.f32.mrb[1].mxu0  ;;  %v960_v35 = vpop.f32.mrb[1].mxu1 }
 0x27b   : > { %v1995_v36 = vpop.f32.mrb[2].mxu0  ;;  %v2011_v37 = vpop.f32.mrb[2].mxu1 }
 0x27c   : > { %v1024_v38 = vpack.c.bf16 %v1995_v36, %v1994_v32  ;;  %v1032_v39 = vpack.c.bf16 %v2011_v37, %v2010_v33  ;;  %v899_v40 = vpop.f32.mrb[3].mxu0  ;;  %v963_v41 = vpop.f32.mrb[3].mxu1 }
 0x27d   : > { %v1023_v42 = vpack.c.bf16 %v899_v40, %v896_v34  ;;  %v1031_v43 = vpack.c.bf16 %v963_v41, %v960_v35 }
 0x27e   : > { %1042 = vst [vmem:[#allocation4 + $0x8] sm:$0xff] %v1024_v38  ;;  %1050 = vst [vmem:[#allocation4 + $0x48] sm:$0xff] %v1032_v39 }
 0x27f   : > { %1041 = vst [vmem:[#allocation4] sm:$0xff] %v1023_v42  ;;  %1049 = vst [vmem:[#allocation4 + $0x40] sm:$0xff] %v1031_v43 }
 0x281   : > { %v1998_v44 = vpop.f32.mrb[4].mxu0  ;;  %v2014_v45 = vpop.f32.mrb[4].mxu1 }
 0x282   : > { %v912_v46 = vpop.f32.mrb[5].mxu0  ;;  %v976_v47 = vpop.f32.mrb[5].mxu1 }
 0x283   : > { %v1999_v48 = vpop.f32.mrb[6].mxu0  ;;  %v2015_v49 = vpop.f32.mrb[6].mxu1 }
 0x284   : > { %v1026_v50 = vpack.c.bf16 %v1999_v48, %v1998_v44  ;;  %v1034_v51 = vpack.c.bf16 %v2015_v49, %v2014_v45  ;;  %v915_v52 = vpop.f32.mrb[7].mxu0  ;;  %v979_v53 = vpop.f32.mrb[7].mxu1 }
 0x285   : > { %v1025_v54 = vpack.c.bf16 %v915_v52, %v912_v46  ;;  %v1033_v55 = vpack.c.bf16 %v979_v53, %v976_v47 }
 0x286   : > { %1044 = vst [vmem:[#allocation4 + $0x18] sm:$0xff] %v1026_v50  ;;  %1052 = vst [vmem:[#allocation4 + $0x58] sm:$0xff] %v1034_v51 }
 0x287   : > { %1043 = vst [vmem:[#allocation4 + $0x10] sm:$0xff] %v1025_v54  ;;  %1051 = vst [vmem:[#allocation4 + $0x50] sm:$0xff] %v1033_v55 }
 0x289   : > { %v2002_v56 = vpop.f32.mrb[8].mxu0  ;;  %v2018_v57 = vpop.f32.mrb[8].mxu1 }
 0x28a   : > { %v928_v58 = vpop.f32.mrb[9].mxu0  ;;  %v992_v59 = vpop.f32.mrb[9].mxu1 }
 0x28b   : > { %v2003_v60 = vpop.f32.mrb[10].mxu0  ;;  %v2019_v61 = vpop.f32.mrb[10].mxu1 }
 0x28c   : > { %v1028_v62 = vpack.c.bf16 %v2003_v60, %v2002_v56  ;;  %v1036_v63 = vpack.c.bf16 %v2019_v61, %v2018_v57  ;;  %v931_v32 = vpop.f32.mrb[11].mxu0  ;;  %v995_v33 = vpop.f32.mrb[11].mxu1 }
 0x28d   : > { %v1027_v34 = vpack.c.bf16 %v931_v32, %v928_v58  ;;  %v1035_v35 = vpack.c.bf16 %v995_v33, %v992_v59 }
 0x28e   : > { %1046 = vst [vmem:[#allocation4 + $0x28] sm:$0xff] %v1028_v62  ;;  %1054 = vst [vmem:[#allocation4 + $0x68] sm:$0xff] %v1036_v63 }
 0x28f   : > { %1045 = vst [vmem:[#allocation4 + $0x20] sm:$0xff] %v1027_v34  ;;  %1053 = vst [vmem:[#allocation4 + $0x60] sm:$0xff] %v1035_v35 }
 0x291   : > { %v2006_v36 = vpop.f32.mrb[12].mxu0  ;;  %v2022_v37 = vpop.f32.mrb[12].mxu1 }
 0x292   : > { %v944_v38 = vpop.f32.mrb[13].mxu0  ;;  %v1008_v39 = vpop.f32.mrb[13].mxu1 }
 0x293   : > { %v2007_v40 = vpop.f32.mrb[14].mxu0  ;;  %v2023_v41 = vpop.f32.mrb[14].mxu1 }
 0x294   : > { %v1030_v42 = vpack.c.bf16 %v2007_v40, %v2006_v36  ;;  %v1038_v43 = vpack.c.bf16 %v2023_v41, %v2022_v37  ;;  %v947_v44 = vpop.f32.mrb[15].mxu0  ;;  %v1011_v45 = vpop.f32.mrb[15].mxu1 }
 0x295   : > { %v1029_v46 = vpack.c.bf16 %v947_v44, %v944_v38  ;;  %v1037_v47 = vpack.c.bf16 %v1011_v45, %v1008_v39 }
 0x296   : > { %1048 = vst [vmem:[#allocation4 + $0x38] sm:$0xff] %v1030_v42  ;;  %1056 = vst [vmem:[#allocation4 + $0x78] sm:$0xff] %v1038_v43 }
 0x297   : > { %1047 = vst [vmem:[#allocation4 + $0x30] sm:$0xff] %v1029_v46  ;;  %1055 = vst [vmem:[#allocation4 + $0x70] sm:$0xff] %v1037_v47 }
 0x298 PF: > { %v1136_v48 = vld [vmem:[#allocation4 + $0x40] sm:$0xff]  ;;  %v1137_v50 = vld [vmem:[#allocation4 + $0x48] sm:$0xff]  ;;  %1176 = vmatprep.mubr.bf16.mxu0 %v2585_v1  ;;  %1240 = vmatprep.mubr.bf16.mxu1 %v2617_v17  ;;  %v1138_v52 = vld [vmem:[#allocation4 + $0x50] sm:$0xff]  ;;  %p1755_p8 = scmp.ge.s32.totalorder %s2343_s18, 2 }
 0x299   : > { %v1128_v49 = vld [vmem:[#allocation4] sm:$0xff]  ;;  %1816 = vmatprep.subr.bf16.mxu0 %v1136_v48  ;;  %2056 = vmatprep.subr.bf16.mxu1 %v1136_v48  ;;  %v1129_v51 = vld [vmem:[#allocation4 + $0x8] sm:$0xff]  ;;  %v1130_v53 = vld [vmem:[#allocation4 + $0x10] sm:$0xff] }
 0x29a   : > { %1817 = vmatpush3.bf16.msra.mxu0 %v1128_v49  ;;  %2064 = vmatpush3.bf16.msra.mxu1 %v1128_v49  ;;  %v1139_v54 = vld [vmem:[#allocation4 + $0x58] sm:$0xff]  ;;  %v1140_v17 = vld [vmem:[#allocation4 + $0x60] sm:$0xff]  ;;  %v1141_v56 = vld [vmem:[#allocation4 + $0x68] sm:$0xff] }
 0x29b   : > { %1818 = vmatprep.subr.bf16.mxu0 %v1137_v50  ;;  %2057 = vmatprep.subr.bf16.mxu1 %v1137_v50  ;;  %v1131_v1 = vld [vmem:[#allocation4 + $0x18] sm:$0xff]  ;;  %v1132_v55 = vld [vmem:[#allocation4 + $0x20] sm:$0xff]  ;;  %v1133_v57 = vld [vmem:[#allocation4 + $0x28] sm:$0xff] }
 0x29d   : > { %v1143_v60 = vld [vmem:[#allocation4 + $0x78] sm:$0xff] }
 0x29e   : > { %1819 = vmatpush3.bf16.msra.mxu0 %v1129_v51  ;;  %2065 = vmatpush3.bf16.msra.mxu1 %v1129_v51  ;;  %v1142_v58 = vld [vmem:[#allocation4 + $0x70] sm:$0xff]  ;;  %v1135_v61 = vld [vmem:[#allocation4 + $0x38] sm:$0xff] }
 0x29f   : > { %1820 = vmatprep.subr.bf16.mxu0 %v1138_v52  ;;  %2058 = vmatprep.subr.bf16.mxu1 %v1138_v52  ;;  %v1134_v59 = vld [vmem:[#allocation4 + $0x30] sm:$0xff] }
 0x2a2   : > { %1821 = vmatpush3.bf16.msra.mxu0 %v1130_v53  ;;  %2066 = vmatpush3.bf16.msra.mxu1 %v1130_v53 }
 0x2a3   : > { %1822 = vmatprep.subr.bf16.mxu0 %v1139_v54  ;;  %2059 = vmatprep.subr.bf16.mxu1 %v1139_v54 }
 0x2a6   : > { %1823 = vmatpush3.bf16.msra.mxu0 %v1131_v1  ;;  %2067 = vmatpush3.bf16.msra.mxu1 %v1131_v1 }
 0x2a7   : > { %1824 = vmatprep.subr.bf16.mxu0 %v1140_v17  ;;  %2060 = vmatprep.subr.bf16.mxu1 %v1140_v17 }
 0x2aa   : > { %1825 = vmatpush3.bf16.msra.mxu0 %v1132_v55  ;;  %2068 = vmatpush3.bf16.msra.mxu1 %v1132_v55 }
 0x2ab   : > { %1826 = vmatprep.subr.bf16.mxu0 %v1141_v56  ;;  %2061 = vmatprep.subr.bf16.mxu1 %v1141_v56 }
 0x2ae   : > { %1827 = vmatpush3.bf16.msra.mxu0 %v1133_v57  ;;  %2069 = vmatpush3.bf16.msra.mxu1 %v1133_v57 }
 0x2af   : > { %1828 = vmatprep.subr.bf16.mxu0 %v1142_v58  ;;  %2062 = vmatprep.subr.bf16.mxu1 %v1142_v58 }
 0x2b2   : > { %1829 = vmatpush3.bf16.msra.mxu0 %v1134_v59  ;;  %2070 = vmatpush3.bf16.msra.mxu1 %v1134_v59 }
 0x2b3   : > { %1830 = vmatprep.subr.bf16.mxu0 %v1143_v60  ;;  %2063 = vmatprep.subr.bf16.mxu1 %v1143_v60 }
 0x2b6   : > { %1831 = vmatpush3.bf16.msra.mxu0 %v1135_v61  ;;  %2071 = vmatpush3.bf16.msra.mxu1 %v1135_v61 }
 0x2b9   : > { %1177 = vmatmul.mubr.bf16.vlgmr.msra.gmra.mrb[0].mxu0 %v2583_v0  ;;  %1241 = vmatmul.mubr.bf16.vlgmr.msra.gmra.mrb[0].mxu1 %v2615_v16 }
 0x2ba   : > { %1184 = vmatprep.mubr.bf16.mxu0 %v2589_v3  ;;  %1248 = vmatprep.mubr.bf16.mxu1 %v2621_v19 }
 0x2c1   : > { %1185 = vmatmul.mubr.bf16.gmra.mrb[4].mxu0 %v2587_v2  ;;  %1249 = vmatmul.mubr.bf16.gmra.mrb[4].mxu1 %v2619_v18 }
 0x2c2   : > { %1192 = vmatprep.mubr.bf16.mxu0 %v2593_v5  ;;  %1256 = vmatprep.mubr.bf16.mxu1 %v2625_v21 }
 0x2c9   : > { %1193 = vmatmul.mubr.bf16.gmra.mrb[8].mxu0 %v2591_v4  ;;  %1257 = vmatmul.mubr.bf16.gmra.mrb[8].mxu1 %v2623_v20  ;;  %v2702_v4 = vld [vmem:[%s287_s29] ss:$0 sm:$0xff] }
 0x2ca   : > { %1200 = vmatprep.mubr.bf16.mxu0 %v2597_v7  ;;  %1264 = vmatprep.mubr.bf16.mxu1 %v2629_v23 }
 0x2d1   : > { %1201 = vmatmul.mubr.bf16.gmra.mrb[12].mxu0 %v2595_v6  ;;  %1265 = vmatmul.mubr.bf16.gmra.mrb[12].mxu1 %v2627_v22 }
 0x2d2   : > { %1208 = vmatprep.mubr.bf16.mxu0 %v2601_v9  ;;  %1272 = vmatprep.mubr.bf16.mxu1 %v2633_v25 }
 0x2d9   : > { %1209 = vmatmul.mubr.bf16.gmra.mrb[16].mxu0 %v2599_v8  ;;  %1273 = vmatmul.mubr.bf16.gmra.mrb[16].mxu1 %v2631_v24 }
 0x2da   : > { %1216 = vmatprep.mubr.bf16.mxu0 %v2605_v11  ;;  %1280 = vmatprep.mubr.bf16.mxu1 %v2637_v27 }
 0x2e1   : > { %1217 = vmatmul.mubr.bf16.gmra.mrb[20].mxu0 %v2603_v10  ;;  %1281 = vmatmul.mubr.bf16.gmra.mrb[20].mxu1 %v2635_v26 }
 0x2e2   : > { %1224 = vmatprep.mubr.bf16.mxu0 %v2609_v13  ;;  %1288 = vmatprep.mubr.bf16.mxu1 %v2641_v29 }
 0x2e9   : > { %1225 = vmatmul.mubr.bf16.gmra.mrb[24].mxu0 %v2607_v12  ;;  %1289 = vmatmul.mubr.bf16.gmra.mrb[24].mxu1 %v2639_v28 }
 0x2ea   : > { %1232 = vmatprep.mubr.bf16.mxu0 %v2613_v15  ;;  %1296 = vmatprep.mubr.bf16.mxu1 %v2645_v31 }
 0x2f1   : > { %1233 = vmatmul.mubr.bf16.gmra.mrb[28].mxu0 %v2611_v14  ;;  %1297 = vmatmul.mubr.bf16.gmra.mrb[28].mxu1 %v2643_v30 }
 0x38c   : > { %v1832_v0 = vpop.f32.mrb[0].mxu0  ;;  %v1880_v2 = vpop.f32.mrb[0].mxu1 }
 0x38d   : > { %v1833_v3 = vpop.f32.mrb[1].mxu0  ;;  %v1881_v5 = vpop.f32.mrb[1].mxu1 }
 0x38e   : > { %v1834_v6 = vadd.f32 %v1833_v3, %v1832_v0  ;;  %v1882_v7 = vadd.f32 %v1881_v5, %v1880_v2  ;;  %v1835_v8 = vpop.f32.mrb[2].mxu0  ;;  %v1883_v9 = vpop.f32.mrb[2].mxu1 }
 0x38f   : > { %v1836_v10 = vpop.f32.mrb[3].mxu0  ;;  %v1884_v11 = vpop.f32.mrb[3].mxu1 }
 0x390   : > { %v2705_v12 = vadd.f32 %v1834_v6, %v2702_v4  ;;  %v2708_v13 = vadd.f32 %v1882_v7, %v2702_v4  ;;  %v1837_v14 = vadd.f32 %v1836_v10, %v1835_v8  ;;  %v1885_v15 = vadd.f32 %v1884_v11, %v1883_v9 }
 0x392   : > { %v2711_v16 = vadd.f32 %v1837_v14, %v2702_v4  ;;  %v2714_v18 = vadd.f32 %v1885_v15, %v2702_v4 }
 0x394   : > { %v1838_v19 = vpop.f32.mrb[4].mxu0  ;;  %v1886_v20 = vpop.f32.mrb[4].mxu1 }
 0x395   : > { %v1839_v21 = vpop.f32.mrb[5].mxu0  ;;  %v1887_v22 = vpop.f32.mrb[5].mxu1 }
 0x396   : > { %v1840_v23 = vadd.f32 %v1839_v21, %v1838_v19  ;;  %v1888_v24 = vadd.f32 %v1887_v22, %v1886_v20  ;;  %v1841_v25 = vpop.f32.mrb[6].mxu0  ;;  %v1889_v26 = vpop.f32.mrb[6].mxu1 }
 0x397   : > { %v1842_v27 = vpop.f32.mrb[7].mxu0  ;;  %v1890_v28 = vpop.f32.mrb[7].mxu1 }
 0x398   : > { %v2717_v29 = vadd.f32 %v1840_v23, %v2702_v4  ;;  %v2720_v30 = vadd.f32 %v1888_v24, %v2702_v4  ;;  %v1843_v31 = vadd.f32 %v1842_v27, %v1841_v25  ;;  %v1891_v62 = vadd.f32 %v1890_v28, %v1889_v26 }
 0x39a   : > { %v2723_v63 = vadd.f32 %v1843_v31, %v2702_v4  ;;  %v2726_v32 = vadd.f32 %v1891_v62, %v2702_v4 }
 0x39c   : > { %v1844_v33 = vpop.f32.mrb[8].mxu0  ;;  %v1892_v34 = vpop.f32.mrb[8].mxu1 }
 0x39d   : > { %v1845_v35 = vpop.f32.mrb[9].mxu0  ;;  %v1893_v36 = vpop.f32.mrb[9].mxu1 }
 0x39e   : > { %v1846_v37 = vadd.f32 %v1845_v35, %v1844_v33  ;;  %v1894_v38 = vadd.f32 %v1893_v36, %v1892_v34  ;;  %v1847_v39 = vpop.f32.mrb[10].mxu0  ;;  %v1895_v40 = vpop.f32.mrb[10].mxu1 }
 0x39f   : > { %v1848_v41 = vpop.f32.mrb[11].mxu0  ;;  %v1896_v42 = vpop.f32.mrb[11].mxu1 }
 0x3a0   : > { %v2729_v43 = vadd.f32 %v1846_v37, %v2702_v4  ;;  %v2732_v44 = vadd.f32 %v1894_v38, %v2702_v4  ;;  %v1849_v45 = vadd.f32 %v1848_v41, %v1847_v39  ;;  %v1897_v46 = vadd.f32 %v1896_v42, %v1895_v40 }
 0x3a2   : > { %v2735_v47 = vadd.f32 %v1849_v45, %v2702_v4  ;;  %v2738_v48 = vadd.f32 %v1897_v46, %v2702_v4 }
 0x3a4   : > { %v1850_v49 = vpop.f32.mrb[12].mxu0  ;;  %v1898_v50 = vpop.f32.mrb[12].mxu1 }
 0x3a5   : > { %v1851_v51 = vpop.f32.mrb[13].mxu0  ;;  %v1899_v52 = vpop.f32.mrb[13].mxu1 }
 0x3a6   : > { %v1852_v53 = vadd.f32 %v1851_v51, %v1850_v49  ;;  %v1900_v54 = vadd.f32 %v1899_v52, %v1898_v50  ;;  %v1853_v1 = vpop.f32.mrb[14].mxu0  ;;  %v1901_v17 = vpop.f32.mrb[14].mxu1 }
 0x3a7   : > { %v1854_v55 = vpop.f32.mrb[15].mxu0  ;;  %v1902_v56 = vpop.f32.mrb[15].mxu1 }
 0x3a8   : > { %v2741_v57 = vadd.f32 %v1852_v53, %v2702_v4  ;;  %v2744_v58 = vadd.f32 %v1900_v54, %v2702_v4  ;;  %v1855_v59 = vadd.f32 %v1854_v55, %v1853_v1  ;;  %v1903_v60 = vadd.f32 %v1902_v56, %v1901_v17 }
 0x3aa   : > { %v2747_v61 = vadd.f32 %v1855_v59, %v2702_v4  ;;  %v2750_v0 = vadd.f32 %v1903_v60, %v2702_v4 }
 0x3ac   : > { %v1856_v2 = vpop.f32.mrb[16].mxu0  ;;  %v1904_v3 = vpop.f32.mrb[16].mxu1 }
 0x3ad   : > { %v1857_v5 = vpop.f32.mrb[17].mxu0  ;;  %v1905_v6 = vpop.f32.mrb[17].mxu1 }
 0x3ae   : > { %v1858_v7 = vadd.f32 %v1857_v5, %v1856_v2  ;;  %v1906_v8 = vadd.f32 %v1905_v6, %v1904_v3  ;;  %v1859_v9 = vpop.f32.mrb[18].mxu0  ;;  %v1907_v10 = vpop.f32.mrb[18].mxu1 }
 0x3af   : > { %v1860_v11 = vpop.f32.mrb[19].mxu0  ;;  %v1908_v14 = vpop.f32.mrb[19].mxu1 }
 0x3b0   : > { %v2753_v15 = vadd.f32 %v1858_v7, %v2702_v4  ;;  %v2756_v19 = vadd.f32 %v1906_v8, %v2702_v4  ;;  %v1861_v20 = vadd.f32 %v1860_v11, %v1859_v9  ;;  %v1909_v21 = vadd.f32 %v1908_v14, %v1907_v10 }
 0x3b2   : > { %v2759_v22 = vadd.f32 %v1861_v20, %v2702_v4  ;;  %v2762_v23 = vadd.f32 %v1909_v21, %v2702_v4 }
 0x3b4   : > { %v1862_v24 = vpop.f32.mrb[20].mxu0  ;;  %v1910_v25 = vpop.f32.mrb[20].mxu1 }
 0x3b5   : > { %v1863_v26 = vpop.f32.mrb[21].mxu0  ;;  %v1911_v27 = vpop.f32.mrb[21].mxu1 }
 0x3b6   : > { %v1864_v28 = vadd.f32 %v1863_v26, %v1862_v24  ;;  %v1912_v31 = vadd.f32 %v1911_v27, %v1910_v25  ;;  %v1865_v62 = vpop.f32.mrb[22].mxu0  ;;  %v1913_v33 = vpop.f32.mrb[22].mxu1 }
 0x3b7   : > { %v1866_v34 = vpop.f32.mrb[23].mxu0  ;;  %v1914_v35 = vpop.f32.mrb[23].mxu1 }
 0x3b8   : > { %v2765_v36 = vadd.f32 %v1864_v28, %v2702_v4  ;;  %v2768_v37 = vadd.f32 %v1912_v31, %v2702_v4  ;;  %v1867_v38 = vadd.f32 %v1866_v34, %v1865_v62  ;;  %v1915_v39 = vadd.f32 %v1914_v35, %v1913_v33 }
 0x3b9   : > { %v1447_v31 = vmax.f32 (!%p1755_p8), %v2705_v12, 0.0  ;;  %v1448_v62 = vmax.f32 (!%p1755_p8), %v2711_v16, 0.0  ;;  %v1449_v33 = vmax.f32 (!%p1755_p8), %v2717_v29, 0.0  ;;  %v1450_v34 = vmax.f32 (!%p1755_p8), %v2723_v63, 0.0 }
 0x3ba   : > { %v2771_v40 = vadd.f32 %v1867_v38, %v2702_v4  ;;  %v2774_v41 = vadd.f32 %v1915_v39, %v2702_v4  ;;  %v1451_v35 = vmax.f32 (!%p1755_p8), %v2729_v43, 0.0  ;;  %v1452_v38 = vmax.f32 (!%p1755_p8), %v2735_v47, 0.0 }
 0x3bb   : > { %v1453_v39 = vmax.f32 (!%p1755_p8), %v2741_v57, 0.0 }
 0x3bc   : > { %v1868_v42 = vpop.f32.mrb[24].mxu0  ;;  %v1916_v45 = vpop.f32.mrb[24].mxu1 }
 0x3bd   : > { %v1869_v46 = vpop.f32.mrb[25].mxu0  ;;  %v1917_v49 = vpop.f32.mrb[25].mxu1 }
 0x3be   : > { %v1870_v50 = vadd.f32 %v1869_v46, %v1868_v42  ;;  %v1918_v51 = vadd.f32 %v1917_v49, %v1916_v45  ;;  %v1871_v52 = vpop.f32.mrb[26].mxu0  ;;  %v1919_v53 = vpop.f32.mrb[26].mxu1  ;;  %v1479_v42 = vpack.c.bf16 (!%p1755_p8), %v1448_v62, %v1447_v31  ;;  %v1480_v45 = vpack.c.bf16 (!%p1755_p8), %v1450_v34, %v1449_v33 }
 0x3bf   : > { %v1872_v54 = vpop.f32.mrb[27].mxu0  ;;  %v1920_v1 = vpop.f32.mrb[27].mxu1  ;;  %v1455_v46 = vmax.f32 (!%p1755_p8), %v2753_v15, 0.0  ;;  %v1456_v49 = vmax.f32 (!%p1755_p8), %v2759_v22, 0.0  ;;  %v1470_v62 = vmax.f32 (!%p1755_p8), %v2750_v0, 0.0  ;;  %v1471_v33 = vmax.f32 (!%p1755_p8), %v2756_v19, 0.0 }
 0x3c0   : > { %v2777_v17 = vadd.f32 %v1870_v50, %v2702_v4  ;;  %v2780_v55 = vadd.f32 %v1918_v51, %v2702_v4  ;;  %v1873_v56 = vadd.f32 %v1872_v54, %v1871_v52  ;;  %v1921_v59 = vadd.f32 %v1920_v1, %v1919_v53  ;;  %1499 = vst [vmem:[#allocation3] sm:$0xff] (!%p1755_p8), %v1479_v42 }
 0x3c1   : > { %v1481_v50 = vpack.c.bf16 (!%p1755_p8), %v1452_v38, %v1451_v35  ;;  %v1457_v52 = vmax.f32 (!%p1755_p8), %v2765_v36, 0.0  ;;  %v1458_v53 = vmax.f32 (!%p1755_p8), %v2771_v40, 0.0  ;;  %1500 = vst [vmem:[#allocation3 + $0x8] sm:$0xff] (!%p1755_p8), %v1480_v45  ;;  %v1483_v54 = vpack.c.bf16 (!%p1755_p8), %v1456_v49, %v1455_v46 }
 0x3c2   : > { %v2783_v60 = vadd.f32 %v1873_v56, %v2702_v4  ;;  %v2786_v2 = vadd.f32 %v1921_v59, %v2702_v4  ;;  %v1459_v1 = vmax.f32 (!%p1755_p8), %v2777_v17, 0.0  ;;  %v1472_v34 = vmax.f32 (!%p1755_p8), %v2762_v23, 0.0 }
 0x3c3   : > { %1501 = vst [vmem:[#allocation3 + $0x10] sm:$0xff] (!%p1755_p8), %v1481_v50  ;;  %1503 = vst [vmem:[#allocation3 + $0x20] sm:$0xff] (!%p1755_p8), %v1483_v54  ;;  %v1473_v38 = vmax.f32 (!%p1755_p8), %v2768_v37, 0.0 }
 0x3c4   : > { %v1874_v3 = vpop.f32.mrb[28].mxu0  ;;  %v1922_v5 = vpop.f32.mrb[28].mxu1  ;;  %1446 = sbr.rel (%p1755_p8) target bundleno = 979 (0x3d3), region = 68  ;;  %v1460_v56 = vmax.f32 (!%p1755_p8), %v2783_v60, 0.0  ;;  %v1491_v45 = vpack.c.bf16 (!%p1755_p8), %v1472_v34, %v1471_v33  ;;  %v1476_v46 = vmax.f32 (!%p1755_p8), %v2786_v2, 0.0 }
 0x3c5   : > { %v1875_v6 = vpop.f32.mrb[29].mxu0  ;;  %v1923_v7 = vpop.f32.mrb[29].mxu1 }
 0x3c6   : > { %v1876_v8 = vadd.f32 %v1875_v6, %v1874_v3  ;;  %v1924_v9 = vadd.f32 %v1923_v7, %v1922_v5  ;;  %v1877_v10 = vpop.f32.mrb[30].mxu0  ;;  %v1925_v11 = vpop.f32.mrb[30].mxu1  ;;  %v1484_v3 = vpack.c.bf16 (!%p1755_p8), %v1458_v53, %v1457_v52  ;;  %v1463_v6 = vmax.f32 (!%p1755_p8), %v2708_v13, 0.0  ;;  %1511 = vst [vmem:[#allocation3 + $0x60] sm:$0xff] (!%p1755_p8), %v1491_v45 }
 0x3c7   : > { %v1878_v14 = vpop.f32.mrb[31].mxu0  ;;  %v1926_v20 = vpop.f32.mrb[31].mxu1  ;;  %v1464_v7 = vmax.f32 (!%p1755_p8), %v2714_v18, 0.0 }
 0x3c8   : > { %v2789_v21 = vadd.f32 %v1876_v8, %v2702_v4  ;;  %v2792_v24 = vadd.f32 %v1924_v9, %v2702_v4  ;;  %v1879_v25 = vadd.f32 %v1878_v14, %v1877_v10  ;;  %v1927_v26 = vadd.f32 %v1926_v20, %v1925_v11  ;;  %1504 = vst [vmem:[#allocation3 + $0x28] sm:$0xff] (!%p1755_p8), %v1484_v3 }
 0x3c9   : > { %v1485_v8 = vpack.c.bf16 (!%p1755_p8), %v1460_v56, %v1459_v1  ;;  %v1465_v9 = vmax.f32 (!%p1755_p8), %v2720_v30, 0.0  ;;  %v1466_v10 = vmax.f32 (!%p1755_p8), %v2726_v32, 0.0  ;;  %v1467_v11 = vmax.f32 (!%p1755_p8), %v2732_v44, 0.0 }
 0x3ca   : > { %v2795_v27 = vadd.f32 %v1879_v25, %v2702_v4  ;;  %v2798_v28 = vadd.f32 %v1927_v26, %v2702_v4  ;;  %v1454_v4 = vmax.f32 (!%p1755_p8), %v2747_v61, 0.0  ;;  %v1461_v59 = vmax.f32 (!%p1755_p8), %v2789_v21, 0.0 }
 0x3cb   : > { %v1487_v20 = vpack.c.bf16 %v1464_v7, %v1463_v6  ;;  %v1468_v25 = vmax.f32 %v2738_v48, 0.0  ;;  %v1469_v26 = vmax.f32 %v2744_v58, 0.0  ;;  %1505 = vst [vmem:[#allocation3 + $0x30] sm:$0xff] %v1485_v8  ;;  %v1488_v31 = vpack.c.bf16 %v1466_v10, %v1465_v9 }
 0x3cc   : > { %v1482_v51 = vpack.c.bf16 %v1454_v4, %v1453_v39  ;;  %v1462_v5 = vmax.f32 %v2795_v27, 0.0  ;;  %v1474_v39 = vmax.f32 %v2774_v41, 0.0  ;;  %v1475_v4 = vmax.f32 %v2780_v55, 0.0 }
 0x3cd   : > { %1507 = vst [vmem:[#allocation3 + $0x40] sm:$0xff] %v1487_v20  ;;  %v1489_v35 = vpack.c.bf16 %v1468_v25, %v1467_v11  ;;  %1508 = vst [vmem:[#allocation3 + $0x48] sm:$0xff] %v1488_v31  ;;  %v1490_v42 = vpack.c.bf16 %v1470_v62, %v1469_v26  ;;  %v1477_v49 = vmax.f32 %v2792_v24, 0.0 }
 0x3ce   : > { %1502 = vst [vmem:[#allocation3 + $0x18] sm:$0xff] %v1482_v51  ;;  %v1486_v14 = vpack.c.bf16 %v1462_v5, %v1461_v59  ;;  %v1492_v50 = vpack.c.bf16 %v1474_v39, %v1473_v38  ;;  %v1478_v51 = vmax.f32 %v2798_v28, 0.0  ;;  %v1493_v52 = vpack.c.bf16 %v1476_v46, %v1475_v4 }
 0x3cf   : > { %1509 = vst [vmem:[#allocation3 + $0x50] sm:$0xff] %v1489_v35  ;;  %1510 = vst [vmem:[#allocation3 + $0x58] sm:$0xff] %v1490_v42 }
 0x3d0   : > { %1506 = vst [vmem:[#allocation3 + $0x38] sm:$0xff] %v1486_v14  ;;  %1512 = vst [vmem:[#allocation3 + $0x68] sm:$0xff] %v1492_v50  ;;  %v1494_v53 = vpack.c.bf16 %v1478_v51, %v1477_v49 }
 0x3d1   : > { %1513 = vst [vmem:[#allocation3 + $0x70] sm:$0xff] %v1493_v52 }
 0x3d2   : > { %1514 = vst [vmem:[#allocation3 + $0x78] sm:$0xff] %v1494_v53 }
 0x3d3 PF: > { %p1756_p10 = scmp.ne.s32.totalorder %s2343_s18, 2 }
 0x3d4   : > { %1519 = vst [vmem:[#allocation12] sm:$0xff] (!%p1756_p10), %v2705_v12  ;;  %1520 = vst [vmem:[#allocation12 + $0x8] sm:$0xff] (!%p1756_p10), %v2711_v16 }
 0x3d5   : > { %1518 = sbr.rel (%p1756_p10) target bundleno = 996 (0x3e4), region = 72  ;;  %1521 = vst [vmem:[#allocation12 + $0x10] sm:$0xff] (!%p1756_p10), %v2717_v29  ;;  %1522 = vst [vmem:[#allocation12 + $0x18] sm:$0xff] (!%p1756_p10), %v2723_v63 }
 0x3d6   : > { %1523 = vst [vmem:[#allocation12 + $0x20] sm:$0xff] (!%p1756_p10), %v2729_v43  ;;  %1524 = vst [vmem:[#allocation12 + $0x28] sm:$0xff] (!%p1756_p10), %v2735_v47 }
 0x3d7   : > { %1525 = vst [vmem:[#allocation12 + $0x30] sm:$0xff] (!%p1756_p10), %v2741_v57  ;;  %1526 = vst [vmem:[#allocation12 + $0x38] sm:$0xff] (!%p1756_p10), %v2747_v61 }
 0x3d8   : > { %1527 = vst [vmem:[#allocation12 + $0x40] sm:$0xff] (!%p1756_p10), %v2753_v15  ;;  %1528 = vst [vmem:[#allocation12 + $0x48] sm:$0xff] (!%p1756_p10), %v2759_v22 }
 0x3d9   : > { %1529 = vst [vmem:[#allocation12 + $0x50] sm:$0xff] (!%p1756_p10), %v2765_v36  ;;  %1530 = vst [vmem:[#allocation12 + $0x58] sm:$0xff] (!%p1756_p10), %v2771_v40 }
 0x3da   : > { %1531 = vst [vmem:[#allocation12 + $0x60] sm:$0xff] (!%p1756_p10), %v2777_v17  ;;  %1532 = vst [vmem:[#allocation12 + $0x68] sm:$0xff] (!%p1756_p10), %v2783_v60 }
 0x3db   : > { %1533 = vst [vmem:[#allocation12 + $0x70] sm:$0xff] (!%p1756_p10), %v2789_v21  ;;  %1534 = vst [vmem:[#allocation12 + $0x78] sm:$0xff] (!%p1756_p10), %v2795_v27 }
 0x3dc   : > { %1535 = vst [vmem:[#allocation12 + $0x80] sm:$0xff] %v2708_v13  ;;  %1536 = vst [vmem:[#allocation12 + $0x88] sm:$0xff] %v2714_v18 }
 0x3dd   : > { %1537 = vst [vmem:[#allocation12 + $0x90] sm:$0xff] %v2720_v30  ;;  %1538 = vst [vmem:[#allocation12 + $0x98] sm:$0xff] %v2726_v32 }
 0x3de   : > { %1539 = vst [vmem:[#allocation12 + $0xa0] sm:$0xff] %v2732_v44  ;;  %1540 = vst [vmem:[#allocation12 + $0xa8] sm:$0xff] %v2738_v48 }
 0x3df   : > { %1541 = vst [vmem:[#allocation12 + $0xb0] sm:$0xff] %v2744_v58  ;;  %1542 = vst [vmem:[#allocation12 + $0xb8] sm:$0xff] %v2750_v0 }
 0x3e0   : > { %1543 = vst [vmem:[#allocation12 + $0xc0] sm:$0xff] %v2756_v19  ;;  %1544 = vst [vmem:[#allocation12 + $0xc8] sm:$0xff] %v2762_v23 }
 0x3e1   : > { %1545 = vst [vmem:[#allocation12 + $0xd0] sm:$0xff] %v2768_v37  ;;  %1546 = vst [vmem:[#allocation12 + $0xd8] sm:$0xff] %v2774_v41 }
 0x3e2   : > { %1547 = vst [vmem:[#allocation12 + $0xe0] sm:$0xff] %v2780_v55  ;;  %1548 = vst [vmem:[#allocation12 + $0xe8] sm:$0xff] %v2786_v2 }
 0x3e3   : > { %1549 = vst [vmem:[#allocation12 + $0xf0] sm:$0xff] %v2792_v24  ;;  %1550 = vst [vmem:[#allocation12 + $0xf8] sm:$0xff] %v2798_v28 }
 0x3e4 PF: > { %p2868_p7 = scmp.eq.s32.totalorder %s1702_s21, 2  ;;  %s2365_s12 = smov [#allocation12]  }
 0x3e5   : > { %s1567_s29 = sshll.u32 %s2365_s12, 4  ;;  %s1568_s29 = int_to_ptr.vmem [resolvable:$true] %s1567_s29 }
 0x3e6   : > { %s2263_s9 = scalar_lea.vmem %s1568_s29, 4096  ;;  %s2269_s11 = scalar_lea.vmem %s1568_s29, 8192 }
 0x3e7   : > { %p2264_p11 = scmp.ne.s32.totalorder %s1568_s29, %s2263_s9  ;;  %p2270_p2 = scmp.lt.s32.totalorder %s1568_s29, %s1568_s29 }
 0x3e8   : > { %p2271_p3 = scmp.lt.s32.totalorder %s2269_s11, %s2263_s9 }
 0x3e9   : > { %p2265_p13 = pnand %p2264_p11, %p2868_p7 }
 0x3ea   : > { %p2272_p12 = por %p2271_p3, %p2270_p2 }
 0x3eb   : > { %p2266_p1 = pneg %p2265_p13 }
 0x3ed   : > { %p2273_p0 = pnand %p2272_p12, %p2266_p1 }
 0x3ef   : > { %2276 = shalt.err (!%p2273_p0)
}
 0x3f0   : > { %s2277_s24 = scalar_lea.hbm %s2915_s4, 4096 }
 0x3f1   : > { %p2278_p5 = scmp.ne.s32.totalorder %s2915_s4, %s2277_s24  ;;  %p2283_p6 = scmp.lt.u32.totalorder %s2277_s24, %s2915_s4 }
 0x3f3   : > { %p2279_p9 = pnand %p2278_p5, %p2868_p7 }
 0x3f5   : > { %p2280_p4 = pneg %p2279_p9 }
 0x3f7   : > { %p2285_p8 = pnand %p2283_p6, %p2280_p4 }
 0x3f9   : > { %2288 = shalt.err (!%p2285_p8)
}
 0x3fa   : > { %s2366_s27 = smov 128   ;;  %s2367_s22 = smov 8  }
 0x3fb   : > { %2091 = dma.vmem_to_hbm [thread:$0]  (%p2868_p7), %s1568_s29, 4096, %s2915_s4, [#allocation9], %s2366_s27, %s2366_s27, %s2367_s22  }
 0x3fc PF: > { %p2109_p10 = scmp.ge.s32.totalorder %s2351_s20, 2  ;;  %s2931_s23 = sadd.s32 4294967294, %s2351_s20  }
 0x3fd   : > { %p2110_p11 = scmp.eq.s32.totalorder %s2931_s23, 2 }
 0x3ff   : > { %p2102_p13 = pnand %p2110_p11, %p2109_p10 }
 0x401   : > { %2326 = dma.done.wait (!%p2102_p13), [#allocation9], 4096  }
 0x402   : > { %2328 = vsyncadd (!%p2102_p13), [#allocation9], 4294963200  ;;  %s23_s20 = sadd.s32 1, %s2351_s20   ;;  %s2932_s15 = smov %s2335_s16 }
 0x403   : > { %p20_p1 = scmp.ge.s32.totalorder %s23_s20, 5   ;;  %s2933_s16 = smov %s2339_s17 }
 0x404   : > { %s2934_s17 = smov %s2497_s14  ;;  %s2935_s18 = smov %s2347_s19 }
 0x405   : > { %s2936_s19 = smov %s2938_s28  ;;  %22 = sbr.rel (!%p20_p1) target bundleno = 8 (0x8), region = 139 }
 0x40c   :  { %1588 = vsyncpa [#allocation8], 1 }
 0x40d   :  { %1590 = vsyncpa [#allocation8 + $0x1], 1 }
 0x40e   :  { %1591 = vsyncpa [#allocation11], 1 }
 0x40f   :  { %1593 = vsyncpa [#allocation11 + $0x1], 1 }
 0x410   :  { %1594 = vsyncpa [#allocation9], 1 }
 0x411   :  { %1596 = vsyncpa [#allocation9 + $0x1], 1 }
 0x412   :  { %1597 = vsyncmov [#allocation6] }
 0x415   :  { %s1598_s13 = vpop.sfrf %1597 }
 0x416   :  { %p1761_p7 = scmp.ne.s32.totalorder %s1598_s13, 0 }
 0x418   :  { %1602 = shalt.err (%p1761_p7)  }

</bundles_post_ra>
